<compile_context>
chip_gen: v5e
topology: v5e:2x2
jax: 0.10.0
libtpu: 0.0.40
codegen_flags: <defaults>
</compile_context>

<pallas_src>
import jax
import jax.numpy as jnp
import numpy as np
from jax import lax
from jax.experimental import pallas as pl
from jax.experimental.pallas import tpu as pltpu


# ----------------------------- Pallas kernel ------------------------------- #
def _decoder_kernel(ids_ref, emb_ref, h0_ref, ht_ref, htT_ref,
                    l1_ref, l2c_ref, l2q_ref, *rest):
    # rest = [(w_ihT, w_hhT, b_rz, b_in, b_hn) * L, out_ref, hout_ref]
    L, B, Hd = h0_ref.shape
    SB = ids_ref.shape[0]
    S = SB // B
    V = emb_ref.shape[0]
    NP = 5
    gru = [rest[NP * l: NP * (l + 1)] for l in range(L)]
    out_ref = rest[NP * L]
    hout_ref = rest[NP * L + 1]

    # ---- load everything once (the time loop is Python-unrolled; repeated
    #      ref loads / bias broadcasts inside it would be re-issued per step) --
    table = emb_ref[...]                      # (V, I)
    Ht = ht_ref[...]                          # (B, S_enc, Hd)
    HtT = htT_ref[...]                        # (B, Hd, S_enc)  pre-transposed
    l1T = l1_ref[...]                         # (Hd, Hd)
    l2cT = l2c_ref[...]                       # (Hd, Hd)
    l2qT = l2q_ref[...]                       # (Hd, Hd)

    w_ihT, w_hhT, b_rz, b_in, b_hn = [], [], [], [], []
    for l in range(L):
        wi, wh, brz, bin_, bhn = gru[l]
        w_ihT.append(wi[...])                                   # (in_l, 3H)
        w_hhT.append(wh[...])                                   # (Hd, 3H)
        b_rz.append(jnp.broadcast_to(brz[...], (B, 2 * Hd)))    # b_ih_rz+b_hh_rz
        b_in.append(jnp.broadcast_to(bin_[...], (B, Hd)))       # b_ih_n
        b_hn.append(jnp.broadcast_to(bhn[...], (B, Hd)))        # b_hh_n

    # ---- fused embedding lookup for ALL time steps (one-hot matmul) -------- #
    # rows are t-major: row n = t*B + b   (ids assumed in [0, V))
    ids = ids_ref[...]                                          # (S*B, 1) int32
    onehot = (ids == lax.broadcasted_iota(jnp.int32, (SB, V), 1)
              ).astype(table.dtype)                             # (S*B, V)
    x_all = jnp.dot(onehot, table,
                    preferred_element_type=jnp.float32)         # (S*B, I)

    # ---- layer-0 input gates for ALL steps (no recurrent dependency) ------- #
    gi0_all = jnp.dot(x_all.astype(w_ihT[0].dtype), w_ihT[0],
                      preferred_element_type=jnp.float32)       # (S*B, 3H)

    # ---- serial GRU recurrence: only truly recurrent work stays here ------- #
    hs = [h0_ref[l] for l in range(L)]                          # each (B, Hd)
    q_steps = []
    for t in range(S):
        x = None
        for l in range(L):
            h_prev = hs[l]
            if l == 0:
                gi = gi0_all[t * B:(t + 1) * B]                 # precomputed
            else:
                gi = jnp.dot(x.astype(w_ihT[l].dtype), w_ihT[l],
                             preferred_element_type=jnp.float32)
            gh = jnp.dot(h_prev.astype(w_hhT[l].dtype), w_hhT[l],
                         preferred_element_type=jnp.float32)
            rz = jax.nn.sigmoid(gi[:, :2 * Hd] + gh[:, :2 * Hd] + b_rz[l])
            r = rz[:, :Hd]
            z = rz[:, Hd:]
            n = jnp.tanh(gi[:, 2 * Hd:] + b_in[l]
                         + r * (gh[:, 2 * Hd:] + b_hn[l]))
            h_new = (1.0 - z) * n + z * h_prev
            hs[l] = h_new
            x = h_new        # inter-layer dropout: identity (eval mode)
        q_steps.append(x)    # top-layer hidden state for step t

    # ---- GlobalAttention: ONE batched pass over all S steps ---------------- #
    # Assemble the (B, S, Hd) query slab with masked selects (pure VPU, no
    # middle-axis concat/transpose relayout); negligible cost at this size.
    step_iota = lax.broadcasted_iota(jnp.int32, (1, S, 1), 1)
    Q = jnp.zeros((B, S, Hd), jnp.float32)
    for t, q_t in enumerate(q_steps):
        Q = jnp.where(step_iota == t, q_t[:, None, :], Q)       # (B, S, Hd)

    # Broadcast shared weights across the batch dim so every contraction is a
    # plain batch-leading MXU matmul.
    l1T_b = jnp.broadcast_to(l1T[None], (B,) + l1T.shape)
    l2cT_b = jnp.broadcast_to(l2cT[None], (B,) + l2cT.shape)
    l2qT_b = jnp.broadcast_to(l2qT[None], (B,) + l2qT.shape)

    q1 = jnp.einsum('bqh,bhk->bqk', Q.astype(l1T.dtype), l1T_b,
                    preferred_element_type=jnp.float32)         # (B, S, Hd)
    scores = jnp.einsum('bqh,bhs->bqs', q1, HtT,
                        preferred_element_type=jnp.float32)     # (B, S, S_enc)
    m = jnp.max(scores, axis=2, keepdims=True)
    p = jnp.exp(scores - m)
    denom = jnp.sum(p, axis=2, keepdims=True)
    a = p * pl.reciprocal(denom, approx=False)                  # softmax (f32)
    c = jnp.einsum('bqs,bsh->bqh', a, Ht,
                   preferred_element_type=jnp.float32)          # (B, S, Hd)
    # L2 split into halves: tanh(c @ W2[:, :Hd].T + q @ W2[:, Hd:].T)
    o_all = jnp.tanh(
        jnp.einsum('bqh,bhk->bqk', c.astype(l2cT.dtype), l2cT_b,
                   preferred_element_type=jnp.float32)
        + jnp.einsum('bqh,bhk->bqk', Q.astype(l2qT.dtype), l2qT_b,
                     preferred_element_type=jnp.float32))       # (B, S, Hd)
    # output dropout: identity (eval mode)

    # ---- stores (all compute is finished; these are off the critical path) - #
    for t in range(S):
        out_ref[t] = o_all[:, t, :].astype(out_ref.dtype)       # (B, Hd) rows
    hout_ref[...] = jnp.stack(hs, axis=0).astype(hout_ref.dtype)  # (L, B, Hd)


# ------------------------------ Wrapper ------------------------------------ #
def decoder_forward(input_ids, h0, H, params, compute_dtype=jnp.float32):
    """input_ids: (S, B) int32; h0: (L, B, Hd); H: (S_enc, B, Hd).

    compute_dtype=jnp.bfloat16 casts matmul operands (weights / embedding);
    accumulation and all gate/softmax math stay f32 (safe on v5e/v6e/v7x).
    """
    S, B = input_ids.shape
    L, _, Hd = h0.shape
    Ht = jnp.transpose(H, (1, 0, 2)).astype(jnp.float32)      # (B, S_enc, Hd)
    HtT = jnp.transpose(H, (1, 2, 0)).astype(jnp.float32)     # (B, Hd, S_enc)

    emb = params["embedding"].astype(compute_dtype)           # (V, I)
    l1T = params["l1"].T.astype(compute_dtype)                # (Hd, Hd)
    l2 = params["l2"]                                         # (Hd, 2*Hd)
    l2cT = l2[:, :Hd].T.astype(compute_dtype)                 # (Hd, Hd)
    l2qT = l2[:, Hd:].T.astype(compute_dtype)                 # (Hd, Hd)

    args = [input_ids.reshape(S * B, 1).astype(jnp.int32),    # t-major rows
            emb, h0.astype(jnp.float32), Ht, HtT, l1T, l2cT, l2qT]
    for l in range(L):
        w_ih, w_hh, b_ih, b_hh = params["gru"][l]
        b_ih = b_ih.astype(jnp.float32)
        b_hh = b_hh.astype(jnp.float32)
        args += [
            w_ih.T.astype(compute_dtype),                     # (in_l, 3*Hd)
            w_hh.T.astype(compute_dtype),                     # (Hd, 3*Hd)
            (b_ih[:2 * Hd] + b_hh[:2 * Hd]).reshape(1, 2 * Hd),  # r/z biases
            b_ih[2 * Hd:].reshape(1, Hd),                     # n gate (input)
            b_hh[2 * Hd:].reshape(1, Hd),                     # n gate (hidden)
        ]

    out_shapes = (
        jax.ShapeDtypeStruct((S, B, Hd), jnp.float32),
        jax.ShapeDtypeStruct((L, B, Hd), jnp.float32),
    )
    return pl.pallas_call(
        _decoder_kernel,
        out_shape=out_shapes,
        in_specs=[pl.BlockSpec(memory_space=pltpu.MemorySpace.VMEM)
                  for _ in args],
        out_specs=(pl.BlockSpec(memory_space=pltpu.MemorySpace.VMEM),
                   pl.BlockSpec(memory_space=pltpu.MemorySpace.VMEM)),
        compiler_params=pltpu.CompilerParams(
            vmem_limit_bytes=32 * 1024 * 1024),
    )(*args)


# --------------------------- Pure-JAX reference ----------------------------- #
def _gru_cell_ref(x, h, w_ih, w_hh, b_ih, b_hh, Hd):
    gi = x @ w_ih.T + b_ih
    gh = h @ w_hh.T + b_hh
    r = jax.nn.sigmoid(gi[:, :Hd] + gh[:, :Hd])
    z = jax.nn.sigmoid(gi[:, Hd:2 * Hd] + gh[:, Hd:2 * Hd])
    n = jnp.tanh(gi[:, 2 * Hd:] + r * gh[:, 2 * Hd:])
    return (1.0 - z) * n + z * h


def decoder_ref(input_ids, h0, H, params):
    embed = params["embedding"][input_ids]
    Ht = jnp.transpose(H, (1, 0, 2))
    L, _, Hd = h0.shape
    h = h0
    outs = []
    for t in range(embed.shape[0]):
        x = embed[t]
        new_h = []
        for l in range(L):
            w_ih, w_hh, b_ih, b_hh = params["gru"][l]
            hn = _gru_cell_ref(x, h[l], w_ih, w_hh, b_ih, b_hh, Hd)
            new_h.append(hn)
            x = hn  # dropout = identity (eval)
        h = jnp.stack(new_h)
        q = x
        q1 = q @ params["l1"].T
        scores = jnp.einsum("bsh,bh->bs", Ht, q1)
        a = jax.nn.softmax(scores, axis=1)
        c = jnp.einsum("bs,bsh->bh", a, Ht)
        o = jnp.tanh(jnp.concatenate([c, q], axis=1) @ params["l2"].T)
        outs.append(o)
    return jnp.stack(outs), h


# --------------------------------- Main ------------------------------------- #
if __name__ == "__main__":
    SEQ_DEC, SEQ_ENC, BATCH = 6, 8, 2
    INPUT_SIZE, HIDDEN, NUM_LAYERS, VOCAB = 32, 32, 2, 20

    key = jax.random.PRNGKey(0)
    keys = jax.random.split(key, 16)

    params = {
        "embedding": 0.1 * jax.random.normal(keys[0], (VOCAB, INPUT_SIZE), jnp.float32),
        "l1": 0.1 * jax.random.normal(keys[1], (HIDDEN, HIDDEN), jnp.float32),
        "l2": 0.1 * jax.random.normal(keys[2], (HIDDEN, 2 * HIDDEN), jnp.float32),
        "gru": [],
    }
    for l in range(NUM_LAYERS):
        in_l = INPUT_SIZE if l == 0 else HIDDEN
        kw = jax.random.split(keys[3 + l], 4)
        params["gru"].append((
            0.1 * jax.random.normal(kw[0], (3 * HIDDEN, in_l), jnp.float32),
            0.1 * jax.random.normal(kw[1], (3 * HIDDEN, HIDDEN), jnp.float32),
            0.1 * jax.random.normal(kw[2], (3 * HIDDEN,), jnp.float32),
            0.1 * jax.random.normal(kw[3], (3 * HIDDEN,), jnp.float32),
        ))

    input_ids = jax.random.randint(keys[10], (SEQ_DEC, BATCH), 0, VOCAB, jnp.int32)
    h0 = 0.1 * jax.random.normal(keys[11], (NUM_LAYERS, BATCH, HIDDEN), jnp.float32)
    H = 0.1 * jax.random.normal(keys[12], (SEQ_ENC, BATCH, HIDDEN), jnp.float32)

    out, hn = decoder_forward(input_ids, h0, H, params)
    jax.block_until_ready((out, hn))

    out_ref, hn_ref = decoder_ref(input_ids, h0, H, params)
    np.testing.assert_allclose(np.asarray(out), np.asarray(out_ref), rtol=1e-5, atol=1e-5)
    np.testing.assert_allclose(np.asarray(hn), np.asarray(hn_ref), rtol=1e-5, atol=1e-5)

    print("KERNEL_OK")
</pallas_src>

<mosaic_0001>
module attributes {stable_mosaic.version = 11 : i64} {
  func.func @_decoder_kernel(%arg0: memref<12x1xi32, #tpu.memory_space<vmem>>, %arg1: memref<20x32xf32, #tpu.memory_space<vmem>>, %arg2: memref<2x2x32xf32, #tpu.memory_space<vmem>>, %arg3: memref<2x8x32xf32, #tpu.memory_space<vmem>>, %arg4: memref<2x32x8xf32, #tpu.memory_space<vmem>>, %arg5: memref<32x32xf32, #tpu.memory_space<vmem>>, %arg6: memref<32x32xf32, #tpu.memory_space<vmem>>, %arg7: memref<32x32xf32, #tpu.memory_space<vmem>>, %arg8: memref<32x96xf32, #tpu.memory_space<vmem>>, %arg9: memref<32x96xf32, #tpu.memory_space<vmem>>, %arg10: memref<1x64xf32, #tpu.memory_space<vmem>>, %arg11: memref<1x32xf32, #tpu.memory_space<vmem>>, %arg12: memref<1x32xf32, #tpu.memory_space<vmem>>, %arg13: memref<32x96xf32, #tpu.memory_space<vmem>>, %arg14: memref<32x96xf32, #tpu.memory_space<vmem>>, %arg15: memref<1x64xf32, #tpu.memory_space<vmem>>, %arg16: memref<1x32xf32, #tpu.memory_space<vmem>>, %arg17: memref<1x32xf32, #tpu.memory_space<vmem>>, %arg18: memref<6x2x32xf32, #tpu.memory_space<vmem>>, %arg19: memref<2x2x32xf32, #tpu.memory_space<vmem>>) attributes {dimension_semantics = [], scalar_prefetch = 0 : i64, scratch_operands = 0 : i64, tpu.core_type = #tpu.core_type<tc>} {
    %c0 = arith.constant 0 : index
    %c0_0 = arith.constant 0 : index
    %0 = vector.load %arg1[%c0, %c0_0] : memref<20x32xf32, #tpu.memory_space<vmem>>, vector<20x32xf32>
    %c0_1 = arith.constant 0 : index
    %c0_2 = arith.constant 0 : index
    %c0_3 = arith.constant 0 : index
    %1 = vector.load %arg3[%c0_1, %c0_2, %c0_3] : memref<2x8x32xf32, #tpu.memory_space<vmem>>, vector<2x8x32xf32>
    %c0_4 = arith.constant 0 : index
    %c0_5 = arith.constant 0 : index
    %c0_6 = arith.constant 0 : index
    %2 = vector.load %arg4[%c0_4, %c0_5, %c0_6] : memref<2x32x8xf32, #tpu.memory_space<vmem>>, vector<2x32x8xf32>
    %c0_7 = arith.constant 0 : index
    %c0_8 = arith.constant 0 : index
    %3 = vector.load %arg5[%c0_7, %c0_8] : memref<32x32xf32, #tpu.memory_space<vmem>>, vector<32x32xf32>
    %c0_9 = arith.constant 0 : index
    %c0_10 = arith.constant 0 : index
    %4 = vector.load %arg6[%c0_9, %c0_10] : memref<32x32xf32, #tpu.memory_space<vmem>>, vector<32x32xf32>
    %c0_11 = arith.constant 0 : index
    %c0_12 = arith.constant 0 : index
    %5 = vector.load %arg7[%c0_11, %c0_12] : memref<32x32xf32, #tpu.memory_space<vmem>>, vector<32x32xf32>
    %c0_13 = arith.constant 0 : index
    %c0_14 = arith.constant 0 : index
    %6 = vector.load %arg8[%c0_13, %c0_14] : memref<32x96xf32, #tpu.memory_space<vmem>>, vector<32x96xf32>
    %c0_15 = arith.constant 0 : index
    %c0_16 = arith.constant 0 : index
    %7 = vector.load %arg9[%c0_15, %c0_16] : memref<32x96xf32, #tpu.memory_space<vmem>>, vector<32x96xf32>
    %c0_17 = arith.constant 0 : index
    %c0_18 = arith.constant 0 : index
    %8 = vector.load %arg10[%c0_17, %c0_18] : memref<1x64xf32, #tpu.memory_space<vmem>>, vector<1x64xf32>
    %9 = vector.shape_cast %8 : vector<1x64xf32> to vector<1x64xf32>
    %10 = vector.broadcast %9 : vector<1x64xf32> to vector<2x64xf32>
    %c0_19 = arith.constant 0 : index
    %c0_20 = arith.constant 0 : index
    %11 = vector.load %arg11[%c0_19, %c0_20] : memref<1x32xf32, #tpu.memory_space<vmem>>, vector<1x32xf32>
    %12 = vector.shape_cast %11 : vector<1x32xf32> to vector<1x32xf32>
    %13 = vector.broadcast %12 : vector<1x32xf32> to vector<2x32xf32>
    %c0_21 = arith.constant 0 : index
    %c0_22 = arith.constant 0 : index
    %14 = vector.load %arg12[%c0_21, %c0_22] : memref<1x32xf32, #tpu.memory_space<vmem>>, vector<1x32xf32>
    %15 = vector.shape_cast %14 : vector<1x32xf32> to vector<1x32xf32>
    %16 = vector.broadcast %15 : vector<1x32xf32> to vector<2x32xf32>
    %c0_23 = arith.constant 0 : index
    %c0_24 = arith.constant 0 : index
    %17 = vector.load %arg13[%c0_23, %c0_24] : memref<32x96xf32, #tpu.memory_space<vmem>>, vector<32x96xf32>
    %c0_25 = arith.constant 0 : index
    %c0_26 = arith.constant 0 : index
    %18 = vector.load %arg14[%c0_25, %c0_26] : memref<32x96xf32, #tpu.memory_space<vmem>>, vector<32x96xf32>
    %c0_27 = arith.constant 0 : index
    %c0_28 = arith.constant 0 : index
    %19 = vector.load %arg15[%c0_27, %c0_28] : memref<1x64xf32, #tpu.memory_space<vmem>>, vector<1x64xf32>
    %20 = vector.shape_cast %19 : vector<1x64xf32> to vector<1x64xf32>
    %21 = vector.broadcast %20 : vector<1x64xf32> to vector<2x64xf32>
    %c0_29 = arith.constant 0 : index
    %c0_30 = arith.constant 0 : index
    %22 = vector.load %arg16[%c0_29, %c0_30] : memref<1x32xf32, #tpu.memory_space<vmem>>, vector<1x32xf32>
    %23 = vector.shape_cast %22 : vector<1x32xf32> to vector<1x32xf32>
    %24 = vector.broadcast %23 : vector<1x32xf32> to vector<2x32xf32>
    %c0_31 = arith.constant 0 : index
    %c0_32 = arith.constant 0 : index
    %25 = vector.load %arg17[%c0_31, %c0_32] : memref<1x32xf32, #tpu.memory_space<vmem>>, vector<1x32xf32>
    %26 = vector.shape_cast %25 : vector<1x32xf32> to vector<1x32xf32>
    %27 = vector.broadcast %26 : vector<1x32xf32> to vector<2x32xf32>
    %c0_33 = arith.constant 0 : index
    %c0_34 = arith.constant 0 : index
    %28 = vector.load %arg0[%c0_33, %c0_34] : memref<12x1xi32, #tpu.memory_space<vmem>>, vector<12x1xi32>
    %29 = tpu.iota {dimensions = array<i32: 1>} : vector<12x20xi32>
    %30 = vector.broadcast %28 : vector<12x1xi32> to vector<12x20xi32>
    %31 = arith.cmpi eq, %30, %29 : vector<12x20xi32>
    %32 = arith.extui %31 : vector<12x20xi1> to vector<12x20xi32>
    %33 = arith.sitofp %32 : vector<12x20xi32> to vector<12x20xf32>
    %cst = arith.constant dense<0.000000e+00> : vector<12x32xf32>
    %34 = tpu.matmul %33, %0, %cst {dimension_numbers = #tpu.dot_dimension_numbers<[1], [0], [0], [1], [0, 0, 1, 1], [], []>} : vector<12x20xf32>, vector<20x32xf32>, vector<12x32xf32> -> vector<12x32xf32>
    %cst_35 = arith.constant dense<0.000000e+00> : vector<12x96xf32>
    %35 = tpu.matmul %34, %6, %cst_35 {dimension_numbers = #tpu.dot_dimension_numbers<[1], [0], [0], [1], [0, 0, 1, 1], [], []>} : vector<12x32xf32>, vector<32x96xf32>, vector<12x96xf32> -> vector<12x96xf32>
    %c0_36 = arith.constant 0 : index
    %c0_37 = arith.constant 0 : index
    %c0_38 = arith.constant 0 : index
    %36 = vector.load %arg2[%c0_36, %c0_37, %c0_38] : memref<2x2x32xf32, #tpu.memory_space<vmem>>, vector<1x2x32xf32>
    %37 = vector.shape_cast %36 : vector<1x2x32xf32> to vector<2x32xf32>
    %c1 = arith.constant 1 : index
    %c0_39 = arith.constant 0 : index
    %c0_40 = arith.constant 0 : index
    %38 = vector.load %arg2[%c1, %c0_39, %c0_40] : memref<2x2x32xf32, #tpu.memory_space<vmem>>, vector<1x2x32xf32>
    %39 = vector.shape_cast %38 : vector<1x2x32xf32> to vector<2x32xf32>
    %40 = vector.extract_strided_slice %35 {offsets = [0, 0], sizes = [2, 96], strides = [1, 1]} : vector<12x96xf32> to vector<2x96xf32>
    %cst_41 = arith.constant dense<0.000000e+00> : vector<2x96xf32>
    %41 = tpu.matmul %37, %7, %cst_41 {dimension_numbers = #tpu.dot_dimension_numbers<[1], [0], [0], [1], [0, 0, 1, 1], [], []>} : vector<2x32xf32>, vector<32x96xf32>, vector<2x96xf32> -> vector<2x96xf32>
    %42 = vector.extract_strided_slice %40 {offsets = [0, 0], sizes = [2, 64], strides = [1, 1]} : vector<2x96xf32> to vector<2x64xf32>
    %43 = vector.extract_strided_slice %41 {offsets = [0, 0], sizes = [2, 64], strides = [1, 1]} : vector<2x96xf32> to vector<2x64xf32>
    %44 = arith.addf %42, %43 : vector<2x64xf32>
    %45 = arith.addf %44, %10 : vector<2x64xf32>
    %46 = arith.negf %45 : vector<2x64xf32>
    %47 = math.exp %46 : vector<2x64xf32>
    %cst_42 = arith.constant 1.000000e+00 : f32
    %48 = vector.broadcast %cst_42 : f32 to vector<2x64xf32>
    %49 = arith.addf %48, %47 : vector<2x64xf32>
    %50 = arith.divf %48, %49 : vector<2x64xf32>
    %51 = vector.extract_strided_slice %50 {offsets = [0, 0], sizes = [2, 32], strides = [1, 1]} : vector<2x64xf32> to vector<2x32xf32>
    %52 = vector.extract_strided_slice %50 {offsets = [0, 32], sizes = [2, 32], strides = [1, 1]} : vector<2x64xf32> to vector<2x32xf32>
    %53 = vector.extract_strided_slice %40 {offsets = [0, 64], sizes = [2, 32], strides = [1, 1]} : vector<2x96xf32> to vector<2x32xf32>
    %54 = arith.addf %53, %13 : vector<2x32xf32>
    %55 = vector.extract_strided_slice %41 {offsets = [0, 64], sizes = [2, 32], strides = [1, 1]} : vector<2x96xf32> to vector<2x32xf32>
    %56 = arith.addf %55, %16 : vector<2x32xf32>
    %57 = arith.mulf %51, %56 : vector<2x32xf32>
    %58 = arith.addf %54, %57 : vector<2x32xf32>
    %59 = math.tanh %58 : vector<2x32xf32>
    %cst_43 = arith.constant 1.000000e+00 : f32
    %60 = vector.broadcast %cst_43 : f32 to vector<2x32xf32>
    %61 = arith.subf %60, %52 : vector<2x32xf32>
    %62 = arith.mulf %61, %59 : vector<2x32xf32>
    %63 = arith.mulf %52, %37 : vector<2x32xf32>
    %64 = arith.addf %62, %63 : vector<2x32xf32>
    %cst_44 = arith.constant dense<0.000000e+00> : vector<2x96xf32>
    %65 = tpu.matmul %64, %17, %cst_44 {dimension_numbers = #tpu.dot_dimension_numbers<[1], [0], [0], [1], [0, 0, 1, 1], [], []>} : vector<2x32xf32>, vector<32x96xf32>, vector<2x96xf32> -> vector<2x96xf32>
    %cst_45 = arith.constant dense<0.000000e+00> : vector<2x96xf32>
    %66 = tpu.matmul %39, %18, %cst_45 {dimension_numbers = #tpu.dot_dimension_numbers<[1], [0], [0], [1], [0, 0, 1, 1], [], []>} : vector<2x32xf32>, vector<32x96xf32>, vector<2x96xf32> -> vector<2x96xf32>
    %67 = vector.extract_strided_slice %65 {offsets = [0, 0], sizes = [2, 64], strides = [1, 1]} : vector<2x96xf32> to vector<2x64xf32>
    %68 = vector.extract_strided_slice %66 {offsets = [0, 0], sizes = [2, 64], strides = [1, 1]} : vector<2x96xf32> to vector<2x64xf32>
    %69 = arith.addf %67, %68 : vector<2x64xf32>
    %70 = arith.addf %69, %21 : vector<2x64xf32>
    %71 = arith.negf %70 : vector<2x64xf32>
    %72 = math.exp %71 : vector<2x64xf32>
    %cst_46 = arith.constant 1.000000e+00 : f32
    %73 = vector.broadcast %cst_46 : f32 to vector<2x64xf32>
    %74 = arith.addf %73, %72 : vector<2x64xf32>
    %75 = arith.divf %73, %74 : vector<2x64xf32>
    %76 = vector.extract_strided_slice %75 {offsets = [0, 0], sizes = [2, 32], strides = [1, 1]} : vector<2x64xf32> to vector<2x32xf32>
    %77 = vector.extract_strided_slice %75 {offsets = [0, 32], sizes = [2, 32], strides = [1, 1]} : vector<2x64xf32> to vector<2x32xf32>
    %78 = vector.extract_strided_slice %65 {offsets = [0, 64], sizes = [2, 32], strides = [1, 1]} : vector<2x96xf32> to vector<2x32xf32>
    %79 = arith.addf %78, %24 : vector<2x32xf32>
    %80 = vector.extract_strided_slice %66 {offsets = [0, 64], sizes = [2, 32], strides = [1, 1]} : vector<2x96xf32> to vector<2x32xf32>
    %81 = arith.addf %80, %27 : vector<2x32xf32>
    %82 = arith.mulf %76, %81 : vector<2x32xf32>
    %83 = arith.addf %79, %82 : vector<2x32xf32>
    %84 = math.tanh %83 : vector<2x32xf32>
    %cst_47 = arith.constant 1.000000e+00 : f32
    %85 = vector.broadcast %cst_47 : f32 to vector<2x32xf32>
    %86 = arith.subf %85, %77 : vector<2x32xf32>
    %87 = arith.mulf %86, %84 : vector<2x32xf32>
    %88 = arith.mulf %77, %39 : vector<2x32xf32>
    %89 = arith.addf %87, %88 : vector<2x32xf32>
    %90 = vector.extract_strided_slice %35 {offsets = [2, 0], sizes = [2, 96], strides = [1, 1]} : vector<12x96xf32> to vector<2x96xf32>
    %cst_48 = arith.constant dense<0.000000e+00> : vector<2x96xf32>
    %91 = tpu.matmul %64, %7, %cst_48 {dimension_numbers = #tpu.dot_dimension_numbers<[1], [0], [0], [1], [0, 0, 1, 1], [], []>} : vector<2x32xf32>, vector<32x96xf32>, vector<2x96xf32> -> vector<2x96xf32>
    %92 = vector.extract_strided_slice %90 {offsets = [0, 0], sizes = [2, 64], strides = [1, 1]} : vector<2x96xf32> to vector<2x64xf32>
    %93 = vector.extract_strided_slice %91 {offsets = [0, 0], sizes = [2, 64], strides = [1, 1]} : vector<2x96xf32> to vector<2x64xf32>
    %94 = arith.addf %92, %93 : vector<2x64xf32>
    %95 = arith.addf %94, %10 : vector<2x64xf32>
    %96 = arith.negf %95 : vector<2x64xf32>
    %97 = math.exp %96 : vector<2x64xf32>
    %cst_49 = arith.constant 1.000000e+00 : f32
    %98 = vector.broadcast %cst_49 : f32 to vector<2x64xf32>
    %99 = arith.addf %98, %97 : vector<2x64xf32>
    %100 = arith.divf %98, %99 : vector<2x64xf32>
    %101 = vector.extract_strided_slice %100 {offsets = [0, 0], sizes = [2, 32], strides = [1, 1]} : vector<2x64xf32> to vector<2x32xf32>
    %102 = vector.extract_strided_slice %100 {offsets = [0, 32], sizes = [2, 32], strides = [1, 1]} : vector<2x64xf32> to vector<2x32xf32>
    %103 = vector.extract_strided_slice %90 {offsets = [0, 64], sizes = [2, 32], strides = [1, 1]} : vector<2x96xf32> to vector<2x32xf32>
    %104 = arith.addf %103, %13 : vector<2x32xf32>
    %105 = vector.extract_strided_slice %91 {offsets = [0, 64], sizes = [2, 32], strides = [1, 1]} : vector<2x96xf32> to vector<2x32xf32>
    %106 = arith.addf %105, %16 : vector<2x32xf32>
    %107 = arith.mulf %101, %106 : vector<2x32xf32>
    %108 = arith.addf %104, %107 : vector<2x32xf32>
    %109 = math.tanh %108 : vector<2x32xf32>
    %cst_50 = arith.constant 1.000000e+00 : f32
    %110 = vector.broadcast %cst_50 : f32 to vector<2x32xf32>
    %111 = arith.subf %110, %102 : vector<2x32xf32>
    %112 = arith.mulf %111, %109 : vector<2x32xf32>
    %113 = arith.mulf %102, %64 : vector<2x32xf32>
    %114 = arith.addf %112, %113 : vector<2x32xf32>
    %cst_51 = arith.constant dense<0.000000e+00> : vector<2x96xf32>
    %115 = tpu.matmul %114, %17, %cst_51 {dimension_numbers = #tpu.dot_dimension_numbers<[1], [0], [0], [1], [0, 0, 1, 1], [], []>} : vector<2x32xf32>, vector<32x96xf32>, vector<2x96xf32> -> vector<2x96xf32>
    %cst_52 = arith.constant dense<0.000000e+00> : vector<2x96xf32>
    %116 = tpu.matmul %89, %18, %cst_52 {dimension_numbers = #tpu.dot_dimension_numbers<[1], [0], [0], [1], [0, 0, 1, 1], [], []>} : vector<2x32xf32>, vector<32x96xf32>, vector<2x96xf32> -> vector<2x96xf32>
    %117 = vector.extract_strided_slice %115 {offsets = [0, 0], sizes = [2, 64], strides = [1, 1]} : vector<2x96xf32> to vector<2x64xf32>
    %118 = vector.extract_strided_slice %116 {offsets = [0, 0], sizes = [2, 64], strides = [1, 1]} : vector<2x96xf32> to vector<2x64xf32>
    %119 = arith.addf %117, %118 : vector<2x64xf32>
    %120 = arith.addf %119, %21 : vector<2x64xf32>
    %121 = arith.negf %120 : vector<2x64xf32>
    %122 = math.exp %121 : vector<2x64xf32>
    %cst_53 = arith.constant 1.000000e+00 : f32
    %123 = vector.broadcast %cst_53 : f32 to vector<2x64xf32>
    %124 = arith.addf %123, %122 : vector<2x64xf32>
    %125 = arith.divf %123, %124 : vector<2x64xf32>
    %126 = vector.extract_strided_slice %125 {offsets = [0, 0], sizes = [2, 32], strides = [1, 1]} : vector<2x64xf32> to vector<2x32xf32>
    %127 = vector.extract_strided_slice %125 {offsets = [0, 32], sizes = [2, 32], strides = [1, 1]} : vector<2x64xf32> to vector<2x32xf32>
    %128 = vector.extract_strided_slice %115 {offsets = [0, 64], sizes = [2, 32], strides = [1, 1]} : vector<2x96xf32> to vector<2x32xf32>
    %129 = arith.addf %128, %24 : vector<2x32xf32>
    %130 = vector.extract_strided_slice %116 {offsets = [0, 64], sizes = [2, 32], strides = [1, 1]} : vector<2x96xf32> to vector<2x32xf32>
    %131 = arith.addf %130, %27 : vector<2x32xf32>
    %132 = arith.mulf %126, %131 : vector<2x32xf32>
    %133 = arith.addf %129, %132 : vector<2x32xf32>
    %134 = math.tanh %133 : vector<2x32xf32>
    %cst_54 = arith.constant 1.000000e+00 : f32
    %135 = vector.broadcast %cst_54 : f32 to vector<2x32xf32>
    %136 = arith.subf %135, %127 : vector<2x32xf32>
    %137 = arith.mulf %136, %134 : vector<2x32xf32>
    %138 = arith.mulf %127, %89 : vector<2x32xf32>
    %139 = arith.addf %137, %138 : vector<2x32xf32>
    %140 = vector.extract_strided_slice %35 {offsets = [4, 0], sizes = [2, 96], strides = [1, 1]} : vector<12x96xf32> to vector<2x96xf32>
    %cst_55 = arith.constant dense<0.000000e+00> : vector<2x96xf32>
    %141 = tpu.matmul %114, %7, %cst_55 {dimension_numbers = #tpu.dot_dimension_numbers<[1], [0], [0], [1], [0, 0, 1, 1], [], []>} : vector<2x32xf32>, vector<32x96xf32>, vector<2x96xf32> -> vector<2x96xf32>
    %142 = vector.extract_strided_slice %140 {offsets = [0, 0], sizes = [2, 64], strides = [1, 1]} : vector<2x96xf32> to vector<2x64xf32>
    %143 = vector.extract_strided_slice %141 {offsets = [0, 0], sizes = [2, 64], strides = [1, 1]} : vector<2x96xf32> to vector<2x64xf32>
    %144 = arith.addf %142, %143 : vector<2x64xf32>
    %145 = arith.addf %144, %10 : vector<2x64xf32>
    %146 = arith.negf %145 : vector<2x64xf32>
    %147 = math.exp %146 : vector<2x64xf32>
    %cst_56 = arith.constant 1.000000e+00 : f32
    %148 = vector.broadcast %cst_56 : f32 to vector<2x64xf32>
    %149 = arith.addf %148, %147 : vector<2x64xf32>
    %150 = arith.divf %148, %149 : vector<2x64xf32>
    %151 = vector.extract_strided_slice %150 {offsets = [0, 0], sizes = [2, 32], strides = [1, 1]} : vector<2x64xf32> to vector<2x32xf32>
    %152 = vector.extract_strided_slice %150 {offsets = [0, 32], sizes = [2, 32], strides = [1, 1]} : vector<2x64xf32> to vector<2x32xf32>
    %153 = vector.extract_strided_slice %140 {offsets = [0, 64], sizes = [2, 32], strides = [1, 1]} : vector<2x96xf32> to vector<2x32xf32>
    %154 = arith.addf %153, %13 : vector<2x32xf32>
    %155 = vector.extract_strided_slice %141 {offsets = [0, 64], sizes = [2, 32], strides = [1, 1]} : vector<2x96xf32> to vector<2x32xf32>
    %156 = arith.addf %155, %16 : vector<2x32xf32>
    %157 = arith.mulf %151, %156 : vector<2x32xf32>
    %158 = arith.addf %154, %157 : vector<2x32xf32>
    %159 = math.tanh %158 : vector<2x32xf32>
    %cst_57 = arith.constant 1.000000e+00 : f32
    %160 = vector.broadcast %cst_57 : f32 to vector<2x32xf32>
    %161 = arith.subf %160, %152 : vector<2x32xf32>
    %162 = arith.mulf %161, %159 : vector<2x32xf32>
    %163 = arith.mulf %152, %114 : vector<2x32xf32>
    %164 = arith.addf %162, %163 : vector<2x32xf32>
    %cst_58 = arith.constant dense<0.000000e+00> : vector<2x96xf32>
    %165 = tpu.matmul %164, %17, %cst_58 {dimension_numbers = #tpu.dot_dimension_numbers<[1], [0], [0], [1], [0, 0, 1, 1], [], []>} : vector<2x32xf32>, vector<32x96xf32>, vector<2x96xf32> -> vector<2x96xf32>
    %cst_59 = arith.constant dense<0.000000e+00> : vector<2x96xf32>
    %166 = tpu.matmul %139, %18, %cst_59 {dimension_numbers = #tpu.dot_dimension_numbers<[1], [0], [0], [1], [0, 0, 1, 1], [], []>} : vector<2x32xf32>, vector<32x96xf32>, vector<2x96xf32> -> vector<2x96xf32>
    %167 = vector.extract_strided_slice %165 {offsets = [0, 0], sizes = [2, 64], strides = [1, 1]} : vector<2x96xf32> to vector<2x64xf32>
    %168 = vector.extract_strided_slice %166 {offsets = [0, 0], sizes = [2, 64], strides = [1, 1]} : vector<2x96xf32> to vector<2x64xf32>
    %169 = arith.addf %167, %168 : vector<2x64xf32>
    %170 = arith.addf %169, %21 : vector<2x64xf32>
    %171 = arith.negf %170 : vector<2x64xf32>
    %172 = math.exp %171 : vector<2x64xf32>
    %cst_60 = arith.constant 1.000000e+00 : f32
    %173 = vector.broadcast %cst_60 : f32 to vector<2x64xf32>
    %174 = arith.addf %173, %172 : vector<2x64xf32>
    %175 = arith.divf %173, %174 : vector<2x64xf32>
    %176 = vector.extract_strided_slice %175 {offsets = [0, 0], sizes = [2, 32], strides = [1, 1]} : vector<2x64xf32> to vector<2x32xf32>
    %177 = vector.extract_strided_slice %175 {offsets = [0, 32], sizes = [2, 32], strides = [1, 1]} : vector<2x64xf32> to vector<2x32xf32>
    %178 = vector.extract_strided_slice %165 {offsets = [0, 64], sizes = [2, 32], strides = [1, 1]} : vector<2x96xf32> to vector<2x32xf32>
    %179 = arith.addf %178, %24 : vector<2x32xf32>
    %180 = vector.extract_strided_slice %166 {offsets = [0, 64], sizes = [2, 32], strides = [1, 1]} : vector<2x96xf32> to vector<2x32xf32>
    %181 = arith.addf %180, %27 : vector<2x32xf32>
    %182 = arith.mulf %176, %181 : vector<2x32xf32>
    %183 = arith.addf %179, %182 : vector<2x32xf32>
    %184 = math.tanh %183 : vector<2x32xf32>
    %cst_61 = arith.constant 1.000000e+00 : f32
    %185 = vector.broadcast %cst_61 : f32 to vector<2x32xf32>
    %186 = arith.subf %185, %177 : vector<2x32xf32>
    %187 = arith.mulf %186, %184 : vector<2x32xf32>
    %188 = arith.mulf %177, %139 : vector<2x32xf32>
    %189 = arith.addf %187, %188 : vector<2x32xf32>
    %190 = vector.extract_strided_slice %35 {offsets = [6, 0], sizes = [2, 96], strides = [1, 1]} : vector<12x96xf32> to vector<2x96xf32>
    %cst_62 = arith.constant dense<0.000000e+00> : vector<2x96xf32>
    %191 = tpu.matmul %164, %7, %cst_62 {dimension_numbers = #tpu.dot_dimension_numbers<[1], [0], [0], [1], [0, 0, 1, 1], [], []>} : vector<2x32xf32>, vector<32x96xf32>, vector<2x96xf32> -> vector<2x96xf32>
    %192 = vector.extract_strided_slice %190 {offsets = [0, 0], sizes = [2, 64], strides = [1, 1]} : vector<2x96xf32> to vector<2x64xf32>
    %193 = vector.extract_strided_slice %191 {offsets = [0, 0], sizes = [2, 64], strides = [1, 1]} : vector<2x96xf32> to vector<2x64xf32>
    %194 = arith.addf %192, %193 : vector<2x64xf32>
    %195 = arith.addf %194, %10 : vector<2x64xf32>
    %196 = arith.negf %195 : vector<2x64xf32>
    %197 = math.exp %196 : vector<2x64xf32>
    %cst_63 = arith.constant 1.000000e+00 : f32
    %198 = vector.broadcast %cst_63 : f32 to vector<2x64xf32>
    %199 = arith.addf %198, %197 : vector<2x64xf32>
    %200 = arith.divf %198, %199 : vector<2x64xf32>
    %201 = vector.extract_strided_slice %200 {offsets = [0, 0], sizes = [2, 32], strides = [1, 1]} : vector<2x64xf32> to vector<2x32xf32>
    %202 = vector.extract_strided_slice %200 {offsets = [0, 32], sizes = [2, 32], strides = [1, 1]} : vector<2x64xf32> to vector<2x32xf32>
    %203 = vector.extract_strided_slice %190 {offsets = [0, 64], sizes = [2, 32], strides = [1, 1]} : vector<2x96xf32> to vector<2x32xf32>
    %204 = arith.addf %203, %13 : vector<2x32xf32>
    %205 = vector.extract_strided_slice %191 {offsets = [0, 64], sizes = [2, 32], strides = [1, 1]} : vector<2x96xf32> to vector<2x32xf32>
    %206 = arith.addf %205, %16 : vector<2x32xf32>
    %207 = arith.mulf %201, %206 : vector<2x32xf32>
    %208 = arith.addf %204, %207 : vector<2x32xf32>
    %209 = math.tanh %208 : vector<2x32xf32>
    %cst_64 = arith.constant 1.000000e+00 : f32
    %210 = vector.broadcast %cst_64 : f32 to vector<2x32xf32>
    %211 = arith.subf %210, %202 : vector<2x32xf32>
    %212 = arith.mulf %211, %209 : vector<2x32xf32>
    %213 = arith.mulf %202, %164 : vector<2x32xf32>
    %214 = arith.addf %212, %213 : vector<2x32xf32>
    %cst_65 = arith.constant dense<0.000000e+00> : vector<2x96xf32>
    %215 = tpu.matmul %214, %17, %cst_65 {dimension_numbers = #tpu.dot_dimension_numbers<[1], [0], [0], [1], [0, 0, 1, 1], [], []>} : vector<2x32xf32>, vector<32x96xf32>, vector<2x96xf32> -> vector<2x96xf32>
    %cst_66 = arith.constant dense<0.000000e+00> : vector<2x96xf32>
    %216 = tpu.matmul %189, %18, %cst_66 {dimension_numbers = #tpu.dot_dimension_numbers<[1], [0], [0], [1], [0, 0, 1, 1], [], []>} : vector<2x32xf32>, vector<32x96xf32>, vector<2x96xf32> -> vector<2x96xf32>
    %217 = vector.extract_strided_slice %215 {offsets = [0, 0], sizes = [2, 64], strides = [1, 1]} : vector<2x96xf32> to vector<2x64xf32>
    %218 = vector.extract_strided_slice %216 {offsets = [0, 0], sizes = [2, 64], strides = [1, 1]} : vector<2x96xf32> to vector<2x64xf32>
    %219 = arith.addf %217, %218 : vector<2x64xf32>
    %220 = arith.addf %219, %21 : vector<2x64xf32>
    %221 = arith.negf %220 : vector<2x64xf32>
    %222 = math.exp %221 : vector<2x64xf32>
    %cst_67 = arith.constant 1.000000e+00 : f32
    %223 = vector.broadcast %cst_67 : f32 to vector<2x64xf32>
    %224 = arith.addf %223, %222 : vector<2x64xf32>
    %225 = arith.divf %223, %224 : vector<2x64xf32>
    %226 = vector.extract_strided_slice %225 {offsets = [0, 0], sizes = [2, 32], strides = [1, 1]} : vector<2x64xf32> to vector<2x32xf32>
    %227 = vector.extract_strided_slice %225 {offsets = [0, 32], sizes = [2, 32], strides = [1, 1]} : vector<2x64xf32> to vector<2x32xf32>
    %228 = vector.extract_strided_slice %215 {offsets = [0, 64], sizes = [2, 32], strides = [1, 1]} : vector<2x96xf32> to vector<2x32xf32>
    %229 = arith.addf %228, %24 : vector<2x32xf32>
    %230 = vector.extract_strided_slice %216 {offsets = [0, 64], sizes = [2, 32], strides = [1, 1]} : vector<2x96xf32> to vector<2x32xf32>
    %231 = arith.addf %230, %27 : vector<2x32xf32>
    %232 = arith.mulf %226, %231 : vector<2x32xf32>
    %233 = arith.addf %229, %232 : vector<2x32xf32>
    %234 = math.tanh %233 : vector<2x32xf32>
    %cst_68 = arith.constant 1.000000e+00 : f32
    %235 = vector.broadcast %cst_68 : f32 to vector<2x32xf32>
    %236 = arith.subf %235, %227 : vector<2x32xf32>
    %237 = arith.mulf %236, %234 : vector<2x32xf32>
    %238 = arith.mulf %227, %189 : vector<2x32xf32>
    %239 = arith.addf %237, %238 : vector<2x32xf32>
    %240 = vector.extract_strided_slice %35 {offsets = [8, 0], sizes = [2, 96], strides = [1, 1]} : vector<12x96xf32> to vector<2x96xf32>
    %cst_69 = arith.constant dense<0.000000e+00> : vector<2x96xf32>
    %241 = tpu.matmul %214, %7, %cst_69 {dimension_numbers = #tpu.dot_dimension_numbers<[1], [0], [0], [1], [0, 0, 1, 1], [], []>} : vector<2x32xf32>, vector<32x96xf32>, vector<2x96xf32> -> vector<2x96xf32>
    %242 = vector.extract_strided_slice %240 {offsets = [0, 0], sizes = [2, 64], strides = [1, 1]} : vector<2x96xf32> to vector<2x64xf32>
    %243 = vector.extract_strided_slice %241 {offsets = [0, 0], sizes = [2, 64], strides = [1, 1]} : vector<2x96xf32> to vector<2x64xf32>
    %244 = arith.addf %242, %243 : vector<2x64xf32>
    %245 = arith.addf %244, %10 : vector<2x64xf32>
    %246 = arith.negf %245 : vector<2x64xf32>
    %247 = math.exp %246 : vector<2x64xf32>
    %cst_70 = arith.constant 1.000000e+00 : f32
    %248 = vector.broadcast %cst_70 : f32 to vector<2x64xf32>
    %249 = arith.addf %248, %247 : vector<2x64xf32>
    %250 = arith.divf %248, %249 : vector<2x64xf32>
    %251 = vector.extract_strided_slice %250 {offsets = [0, 0], sizes = [2, 32], strides = [1, 1]} : vector<2x64xf32> to vector<2x32xf32>
    %252 = vector.extract_strided_slice %250 {offsets = [0, 32], sizes = [2, 32], strides = [1, 1]} : vector<2x64xf32> to vector<2x32xf32>
    %253 = vector.extract_strided_slice %240 {offsets = [0, 64], sizes = [2, 32], strides = [1, 1]} : vector<2x96xf32> to vector<2x32xf32>
    %254 = arith.addf %253, %13 : vector<2x32xf32>
    %255 = vector.extract_strided_slice %241 {offsets = [0, 64], sizes = [2, 32], strides = [1, 1]} : vector<2x96xf32> to vector<2x32xf32>
    %256 = arith.addf %255, %16 : vector<2x32xf32>
    %257 = arith.mulf %251, %256 : vector<2x32xf32>
    %258 = arith.addf %254, %257 : vector<2x32xf32>
    %259 = math.tanh %258 : vector<2x32xf32>
    %cst_71 = arith.constant 1.000000e+00 : f32
    %260 = vector.broadcast %cst_71 : f32 to vector<2x32xf32>
    %261 = arith.subf %260, %252 : vector<2x32xf32>
    %262 = arith.mulf %261, %259 : vector<2x32xf32>
    %263 = arith.mulf %252, %214 : vector<2x32xf32>
    %264 = arith.addf %262, %263 : vector<2x32xf32>
    %cst_72 = arith.constant dense<0.000000e+00> : vector<2x96xf32>
    %265 = tpu.matmul %264, %17, %cst_72 {dimension_numbers = #tpu.dot_dimension_numbers<[1], [0], [0], [1], [0, 0, 1, 1], [], []>} : vector<2x32xf32>, vector<32x96xf32>, vector<2x96xf32> -> vector<2x96xf32>
    %cst_73 = arith.constant dense<0.000000e+00> : vector<2x96xf32>
    %266 = tpu.matmul %239, %18, %cst_73 {dimension_numbers = #tpu.dot_dimension_numbers<[1], [0], [0], [1], [0, 0, 1, 1], [], []>} : vector<2x32xf32>, vector<32x96xf32>, vector<2x96xf32> -> vector<2x96xf32>
    %267 = vector.extract_strided_slice %265 {offsets = [0, 0], sizes = [2, 64], strides = [1, 1]} : vector<2x96xf32> to vector<2x64xf32>
    %268 = vector.extract_strided_slice %266 {offsets = [0, 0], sizes = [2, 64], strides = [1, 1]} : vector<2x96xf32> to vector<2x64xf32>
    %269 = arith.addf %267, %268 : vector<2x64xf32>
    %270 = arith.addf %269, %21 : vector<2x64xf32>
    %271 = arith.negf %270 : vector<2x64xf32>
    %272 = math.exp %271 : vector<2x64xf32>
    %cst_74 = arith.constant 1.000000e+00 : f32
    %273 = vector.broadcast %cst_74 : f32 to vector<2x64xf32>
    %274 = arith.addf %273, %272 : vector<2x64xf32>
    %275 = arith.divf %273, %274 : vector<2x64xf32>
    %276 = vector.extract_strided_slice %275 {offsets = [0, 0], sizes = [2, 32], strides = [1, 1]} : vector<2x64xf32> to vector<2x32xf32>
    %277 = vector.extract_strided_slice %275 {offsets = [0, 32], sizes = [2, 32], strides = [1, 1]} : vector<2x64xf32> to vector<2x32xf32>
    %278 = vector.extract_strided_slice %265 {offsets = [0, 64], sizes = [2, 32], strides = [1, 1]} : vector<2x96xf32> to vector<2x32xf32>
    %279 = arith.addf %278, %24 : vector<2x32xf32>
    %280 = vector.extract_strided_slice %266 {offsets = [0, 64], sizes = [2, 32], strides = [1, 1]} : vector<2x96xf32> to vector<2x32xf32>
    %281 = arith.addf %280, %27 : vector<2x32xf32>
    %282 = arith.mulf %276, %281 : vector<2x32xf32>
    %283 = arith.addf %279, %282 : vector<2x32xf32>
    %284 = math.tanh %283 : vector<2x32xf32>
    %cst_75 = arith.constant 1.000000e+00 : f32
    %285 = vector.broadcast %cst_75 : f32 to vector<2x32xf32>
    %286 = arith.subf %285, %277 : vector<2x32xf32>
    %287 = arith.mulf %286, %284 : vector<2x32xf32>
    %288 = arith.mulf %277, %239 : vector<2x32xf32>
    %289 = arith.addf %287, %288 : vector<2x32xf32>
    %290 = vector.extract_strided_slice %35 {offsets = [10, 0], sizes = [2, 96], strides = [1, 1]} : vector<12x96xf32> to vector<2x96xf32>
    %cst_76 = arith.constant dense<0.000000e+00> : vector<2x96xf32>
    %291 = tpu.matmul %264, %7, %cst_76 {dimension_numbers = #tpu.dot_dimension_numbers<[1], [0], [0], [1], [0, 0, 1, 1], [], []>} : vector<2x32xf32>, vector<32x96xf32>, vector<2x96xf32> -> vector<2x96xf32>
    %292 = vector.extract_strided_slice %290 {offsets = [0, 0], sizes = [2, 64], strides = [1, 1]} : vector<2x96xf32> to vector<2x64xf32>
    %293 = vector.extract_strided_slice %291 {offsets = [0, 0], sizes = [2, 64], strides = [1, 1]} : vector<2x96xf32> to vector<2x64xf32>
    %294 = arith.addf %292, %293 : vector<2x64xf32>
    %295 = arith.addf %294, %10 : vector<2x64xf32>
    %296 = arith.negf %295 : vector<2x64xf32>
    %297 = math.exp %296 : vector<2x64xf32>
    %cst_77 = arith.constant 1.000000e+00 : f32
    %298 = vector.broadcast %cst_77 : f32 to vector<2x64xf32>
    %299 = arith.addf %298, %297 : vector<2x64xf32>
    %300 = arith.divf %298, %299 : vector<2x64xf32>
    %301 = vector.extract_strided_slice %300 {offsets = [0, 0], sizes = [2, 32], strides = [1, 1]} : vector<2x64xf32> to vector<2x32xf32>
    %302 = vector.extract_strided_slice %300 {offsets = [0, 32], sizes = [2, 32], strides = [1, 1]} : vector<2x64xf32> to vector<2x32xf32>
    %303 = vector.extract_strided_slice %290 {offsets = [0, 64], sizes = [2, 32], strides = [1, 1]} : vector<2x96xf32> to vector<2x32xf32>
    %304 = arith.addf %303, %13 : vector<2x32xf32>
    %305 = vector.extract_strided_slice %291 {offsets = [0, 64], sizes = [2, 32], strides = [1, 1]} : vector<2x96xf32> to vector<2x32xf32>
    %306 = arith.addf %305, %16 : vector<2x32xf32>
    %307 = arith.mulf %301, %306 : vector<2x32xf32>
    %308 = arith.addf %304, %307 : vector<2x32xf32>
    %309 = math.tanh %308 : vector<2x32xf32>
    %cst_78 = arith.constant 1.000000e+00 : f32
    %310 = vector.broadcast %cst_78 : f32 to vector<2x32xf32>
    %311 = arith.subf %310, %302 : vector<2x32xf32>
    %312 = arith.mulf %311, %309 : vector<2x32xf32>
    %313 = arith.mulf %302, %264 : vector<2x32xf32>
    %314 = arith.addf %312, %313 : vector<2x32xf32>
    %cst_79 = arith.constant dense<0.000000e+00> : vector<2x96xf32>
    %315 = tpu.matmul %314, %17, %cst_79 {dimension_numbers = #tpu.dot_dimension_numbers<[1], [0], [0], [1], [0, 0, 1, 1], [], []>} : vector<2x32xf32>, vector<32x96xf32>, vector<2x96xf32> -> vector<2x96xf32>
    %cst_80 = arith.constant dense<0.000000e+00> : vector<2x96xf32>
    %316 = tpu.matmul %289, %18, %cst_80 {dimension_numbers = #tpu.dot_dimension_numbers<[1], [0], [0], [1], [0, 0, 1, 1], [], []>} : vector<2x32xf32>, vector<32x96xf32>, vector<2x96xf32> -> vector<2x96xf32>
    %317 = vector.extract_strided_slice %315 {offsets = [0, 0], sizes = [2, 64], strides = [1, 1]} : vector<2x96xf32> to vector<2x64xf32>
    %318 = vector.extract_strided_slice %316 {offsets = [0, 0], sizes = [2, 64], strides = [1, 1]} : vector<2x96xf32> to vector<2x64xf32>
    %319 = arith.addf %317, %318 : vector<2x64xf32>
    %320 = arith.addf %319, %21 : vector<2x64xf32>
    %321 = arith.negf %320 : vector<2x64xf32>
    %322 = math.exp %321 : vector<2x64xf32>
    %cst_81 = arith.constant 1.000000e+00 : f32
    %323 = vector.broadcast %cst_81 : f32 to vector<2x64xf32>
    %324 = arith.addf %323, %322 : vector<2x64xf32>
    %325 = arith.divf %323, %324 : vector<2x64xf32>
    %326 = vector.extract_strided_slice %325 {offsets = [0, 0], sizes = [2, 32], strides = [1, 1]} : vector<2x64xf32> to vector<2x32xf32>
    %327 = vector.extract_strided_slice %325 {offsets = [0, 32], sizes = [2, 32], strides = [1, 1]} : vector<2x64xf32> to vector<2x32xf32>
    %328 = vector.extract_strided_slice %315 {offsets = [0, 64], sizes = [2, 32], strides = [1, 1]} : vector<2x96xf32> to vector<2x32xf32>
    %329 = arith.addf %328, %24 : vector<2x32xf32>
    %330 = vector.extract_strided_slice %316 {offsets = [0, 64], sizes = [2, 32], strides = [1, 1]} : vector<2x96xf32> to vector<2x32xf32>
    %331 = arith.addf %330, %27 : vector<2x32xf32>
    %332 = arith.mulf %326, %331 : vector<2x32xf32>
    %333 = arith.addf %329, %332 : vector<2x32xf32>
    %334 = math.tanh %333 : vector<2x32xf32>
    %cst_82 = arith.constant 1.000000e+00 : f32
    %335 = vector.broadcast %cst_82 : f32 to vector<2x32xf32>
    %336 = arith.subf %335, %327 : vector<2x32xf32>
    %337 = arith.mulf %336, %334 : vector<2x32xf32>
    %338 = arith.mulf %327, %289 : vector<2x32xf32>
    %339 = arith.addf %337, %338 : vector<2x32xf32>
    %340 = tpu.iota {dimensions = array<i32: 1>} : vector<1x6x1xi32>
    %cst_83 = arith.constant 0.000000e+00 : f32
    %341 = vector.broadcast %cst_83 : f32 to vector<2x6x32xf32>
    %c0_i32 = arith.constant 0 : i32
    %342 = vector.broadcast %c0_i32 : i32 to vector<1x6x1xi32>
    %343 = arith.cmpi eq, %340, %342 : vector<1x6x1xi32>
    %344 = vector.shape_cast %89 : vector<2x32xf32> to vector<2x1x32xf32>
    %345 = vector.shape_cast %343 : vector<1x6x1xi1> to vector<1x6x1xi1>
    %346 = vector.broadcast %345 : vector<1x6x1xi1> to vector<2x6x32xi1>
    %347 = vector.shape_cast %344 : vector<2x1x32xf32> to vector<2x1x32xf32>
    %348 = vector.broadcast %347 : vector<2x1x32xf32> to vector<2x6x32xf32>
    %349 = arith.select %346, %348, %341 : vector<2x6x32xi1>, vector<2x6x32xf32>
    %c1_i32 = arith.constant 1 : i32
    %350 = vector.broadcast %c1_i32 : i32 to vector<1x6x1xi32>
    %351 = arith.cmpi eq, %340, %350 : vector<1x6x1xi32>
    %352 = vector.shape_cast %139 : vector<2x32xf32> to vector<2x1x32xf32>
    %353 = vector.shape_cast %351 : vector<1x6x1xi1> to vector<1x6x1xi1>
    %354 = vector.broadcast %353 : vector<1x6x1xi1> to vector<2x6x32xi1>
    %355 = vector.shape_cast %352 : vector<2x1x32xf32> to vector<2x1x32xf32>
    %356 = vector.broadcast %355 : vector<2x1x32xf32> to vector<2x6x32xf32>
    %357 = arith.select %354, %356, %349 : vector<2x6x32xi1>, vector<2x6x32xf32>
    %c2_i32 = arith.constant 2 : i32
    %358 = vector.broadcast %c2_i32 : i32 to vector<1x6x1xi32>
    %359 = arith.cmpi eq, %340, %358 : vector<1x6x1xi32>
    %360 = vector.shape_cast %189 : vector<2x32xf32> to vector<2x1x32xf32>
    %361 = vector.shape_cast %359 : vector<1x6x1xi1> to vector<1x6x1xi1>
    %362 = vector.broadcast %361 : vector<1x6x1xi1> to vector<2x6x32xi1>
    %363 = vector.shape_cast %360 : vector<2x1x32xf32> to vector<2x1x32xf32>
    %364 = vector.broadcast %363 : vector<2x1x32xf32> to vector<2x6x32xf32>
    %365 = arith.select %362, %364, %357 : vector<2x6x32xi1>, vector<2x6x32xf32>
    %c3_i32 = arith.constant 3 : i32
    %366 = vector.broadcast %c3_i32 : i32 to vector<1x6x1xi32>
    %367 = arith.cmpi eq, %340, %366 : vector<1x6x1xi32>
    %368 = vector.shape_cast %239 : vector<2x32xf32> to vector<2x1x32xf32>
    %369 = vector.shape_cast %367 : vector<1x6x1xi1> to vector<1x6x1xi1>
    %370 = vector.broadcast %369 : vector<1x6x1xi1> to vector<2x6x32xi1>
    %371 = vector.shape_cast %368 : vector<2x1x32xf32> to vector<2x1x32xf32>
    %372 = vector.broadcast %371 : vector<2x1x32xf32> to vector<2x6x32xf32>
    %373 = arith.select %370, %372, %365 : vector<2x6x32xi1>, vector<2x6x32xf32>
    %c4_i32 = arith.constant 4 : i32
    %374 = vector.broadcast %c4_i32 : i32 to vector<1x6x1xi32>
    %375 = arith.cmpi eq, %340, %374 : vector<1x6x1xi32>
    %376 = vector.shape_cast %289 : vector<2x32xf32> to vector<2x1x32xf32>
    %377 = vector.shape_cast %375 : vector<1x6x1xi1> to vector<1x6x1xi1>
    %378 = vector.broadcast %377 : vector<1x6x1xi1> to vector<2x6x32xi1>
    %379 = vector.shape_cast %376 : vector<2x1x32xf32> to vector<2x1x32xf32>
    %380 = vector.broadcast %379 : vector<2x1x32xf32> to vector<2x6x32xf32>
    %381 = arith.select %378, %380, %373 : vector<2x6x32xi1>, vector<2x6x32xf32>
    %c5_i32 = arith.constant 5 : i32
    %382 = vector.broadcast %c5_i32 : i32 to vector<1x6x1xi32>
    %383 = arith.cmpi eq, %340, %382 : vector<1x6x1xi32>
    %384 = vector.shape_cast %339 : vector<2x32xf32> to vector<2x1x32xf32>
    %385 = vector.shape_cast %383 : vector<1x6x1xi1> to vector<1x6x1xi1>
    %386 = vector.broadcast %385 : vector<1x6x1xi1> to vector<2x6x32xi1>
    %387 = vector.shape_cast %384 : vector<2x1x32xf32> to vector<2x1x32xf32>
    %388 = vector.broadcast %387 : vector<2x1x32xf32> to vector<2x6x32xf32>
    %389 = arith.select %386, %388, %381 : vector<2x6x32xi1>, vector<2x6x32xf32>
    %390 = vector.shape_cast %3 : vector<32x32xf32> to vector<1x32x32xf32>
    %391 = vector.shape_cast %390 : vector<1x32x32xf32> to vector<1x32x32xf32>
    %392 = vector.broadcast %391 : vector<1x32x32xf32> to vector<2x32x32xf32>
    %393 = vector.shape_cast %4 : vector<32x32xf32> to vector<1x32x32xf32>
    %394 = vector.shape_cast %393 : vector<1x32x32xf32> to vector<1x32x32xf32>
    %395 = vector.broadcast %394 : vector<1x32x32xf32> to vector<2x32x32xf32>
    %396 = vector.shape_cast %5 : vector<32x32xf32> to vector<1x32x32xf32>
    %397 = vector.shape_cast %396 : vector<1x32x32xf32> to vector<1x32x32xf32>
    %398 = vector.broadcast %397 : vector<1x32x32xf32> to vector<2x32x32xf32>
    "tpu.trace_start"() <{level = 10 : i32, message = "bqh,bhk->bqk"}> : () -> ()
    %cst_84 = arith.constant dense<0.000000e+00> : vector<2x6x32xf32>
    %399 = tpu.matmul %389, %392, %cst_84 {dimension_numbers = #tpu.dot_dimension_numbers<[2], [1], [1], [2], [0, 0, 0, 1, 1, 2], [0], [0]>} : vector<2x6x32xf32>, vector<2x32x32xf32>, vector<2x6x32xf32> -> vector<2x6x32xf32>
    "tpu.trace_stop"() : () -> ()
    "tpu.trace_start"() <{level = 10 : i32, message = "bqh,bhs->bqs"}> : () -> ()
    %cst_85 = arith.constant dense<0.000000e+00> : vector<2x6x8xf32>
    %400 = tpu.matmul %399, %2, %cst_85 {dimension_numbers = #tpu.dot_dimension_numbers<[2], [1], [1], [2], [0, 0, 0, 1, 1, 2], [0], [0]>} : vector<2x6x32xf32>, vector<2x32x8xf32>, vector<2x6x8xf32> -> vector<2x6x8xf32>
    "tpu.trace_stop"() : () -> ()
    %cst_86 = arith.constant dense<0xFF800000> : vector<2x6xf32>
    %401 = vector.multi_reduction <maximumf>, %400, %cst_86 [2] : vector<2x6x8xf32> to vector<2x6xf32>
    %402 = vector.shape_cast %401 : vector<2x6xf32> to vector<2x6x1xf32>
    %403 = vector.broadcast %402 : vector<2x6x1xf32> to vector<2x6x8xf32>
    %404 = arith.subf %400, %403 : vector<2x6x8xf32>
    %405 = math.exp %404 : vector<2x6x8xf32>
    %cst_87 = arith.constant dense<0.000000e+00> : vector<2x6xf32>
    %406 = vector.multi_reduction <add>, %405, %cst_87 [2] : vector<2x6x8xf32> to vector<2x6xf32>
    %407 = vector.shape_cast %406 : vector<2x6xf32> to vector<2x6x1xf32>
    %408 = tpu.reciprocal %407 : vector<2x6x1xf32> -> vector<2x6x1xf32>
    %409 = vector.broadcast %408 : vector<2x6x1xf32> to vector<2x6x8xf32>
    %410 = arith.mulf %405, %409 : vector<2x6x8xf32>
    "tpu.trace_start"() <{level = 10 : i32, message = "bqs,bsh->bqh"}> : () -> ()
    %cst_88 = arith.constant dense<0.000000e+00> : vector<2x6x32xf32>
    %411 = tpu.matmul %410, %1, %cst_88 {dimension_numbers = #tpu.dot_dimension_numbers<[2], [1], [1], [2], [0, 0, 0, 1, 1, 2], [0], [0]>} : vector<2x6x8xf32>, vector<2x8x32xf32>, vector<2x6x32xf32> -> vector<2x6x32xf32>
    "tpu.trace_stop"() : () -> ()
    "tpu.trace_start"() <{level = 10 : i32, message = "bqh,bhk->bqk"}> : () -> ()
    %cst_89 = arith.constant dense<0.000000e+00> : vector<2x6x32xf32>
    %412 = tpu.matmul %411, %395, %cst_89 {dimension_numbers = #tpu.dot_dimension_numbers<[2], [1], [1], [2], [0, 0, 0, 1, 1, 2], [0], [0]>} : vector<2x6x32xf32>, vector<2x32x32xf32>, vector<2x6x32xf32> -> vector<2x6x32xf32>
    %cst_90 = arith.constant dense<0.000000e+00> : vector<2x6x32xf32>
    %413 = tpu.matmul %389, %398, %cst_90 {dimension_numbers = #tpu.dot_dimension_numbers<[2], [1], [1], [2], [0, 0, 0, 1, 1, 2], [0], [0]>} : vector<2x6x32xf32>, vector<2x32x32xf32>, vector<2x6x32xf32> -> vector<2x6x32xf32>
    "tpu.trace_stop"() : () -> ()
    %414 = arith.addf %412, %413 : vector<2x6x32xf32>
    %415 = math.tanh %414 : vector<2x6x32xf32>
    %416 = vector.extract_strided_slice %415 {offsets = [0, 0, 0], sizes = [2, 1, 32], strides = [1, 1, 1]} : vector<2x6x32xf32> to vector<2x1x32xf32>
    %417 = vector.shape_cast %416 : vector<2x1x32xf32> to vector<2x32xf32>
    %c0_91 = arith.constant 0 : index
    %c0_92 = arith.constant 0 : index
    %c0_93 = arith.constant 0 : index
    %418 = vector.load %arg18[%c0_91, %c0_92, %c0_93] : memref<6x2x32xf32, #tpu.memory_space<vmem>>, vector<1x2x32xf32>
    %419 = vector.shape_cast %418 : vector<1x2x32xf32> to vector<2x32xf32>
    %420 = vector.shape_cast %417 : vector<2x32xf32> to vector<1x2x32xf32>
    tpu.vector_store %arg18[%c0_91, %c0_92, %c0_93], %420 {strides = array<i32>} : memref<6x2x32xf32, #tpu.memory_space<vmem>>, vector<1x2x32xf32>,
    %421 = vector.extract_strided_slice %415 {offsets = [0, 1, 0], sizes = [2, 1, 32], strides = [1, 1, 1]} : vector<2x6x32xf32> to vector<2x1x32xf32>
    %422 = vector.shape_cast %421 : vector<2x1x32xf32> to vector<2x32xf32>
    %c1_94 = arith.constant 1 : index
    %c0_95 = arith.constant 0 : index
    %c0_96 = arith.constant 0 : index
    %423 = vector.load %arg18[%c1_94, %c0_95, %c0_96] : memref<6x2x32xf32, #tpu.memory_space<vmem>>, vector<1x2x32xf32>
    %424 = vector.shape_cast %423 : vector<1x2x32xf32> to vector<2x32xf32>
    %425 = vector.shape_cast %422 : vector<2x32xf32> to vector<1x2x32xf32>
    tpu.vector_store %arg18[%c1_94, %c0_95, %c0_96], %425 {strides = array<i32>} : memref<6x2x32xf32, #tpu.memory_space<vmem>>, vector<1x2x32xf32>,
    %426 = vector.extract_strided_slice %415 {offsets = [0, 2, 0], sizes = [2, 1, 32], strides = [1, 1, 1]} : vector<2x6x32xf32> to vector<2x1x32xf32>
    %427 = vector.shape_cast %426 : vector<2x1x32xf32> to vector<2x32xf32>
    %c2 = arith.constant 2 : index
    %c0_97 = arith.constant 0 : index
    %c0_98 = arith.constant 0 : index
    %428 = vector.load %arg18[%c2, %c0_97, %c0_98] : memref<6x2x32xf32, #tpu.memory_space<vmem>>, vector<1x2x32xf32>
    %429 = vector.shape_cast %428 : vector<1x2x32xf32> to vector<2x32xf32>
    %430 = vector.shape_cast %427 : vector<2x32xf32> to vector<1x2x32xf32>
    tpu.vector_store %arg18[%c2, %c0_97, %c0_98], %430 {strides = array<i32>} : memref<6x2x32xf32, #tpu.memory_space<vmem>>, vector<1x2x32xf32>,
    %431 = vector.extract_strided_slice %415 {offsets = [0, 3, 0], sizes = [2, 1, 32], strides = [1, 1, 1]} : vector<2x6x32xf32> to vector<2x1x32xf32>
    %432 = vector.shape_cast %431 : vector<2x1x32xf32> to vector<2x32xf32>
    %c3 = arith.constant 3 : index
    %c0_99 = arith.constant 0 : index
    %c0_100 = arith.constant 0 : index
    %433 = vector.load %arg18[%c3, %c0_99, %c0_100] : memref<6x2x32xf32, #tpu.memory_space<vmem>>, vector<1x2x32xf32>
    %434 = vector.shape_cast %433 : vector<1x2x32xf32> to vector<2x32xf32>
    %435 = vector.shape_cast %432 : vector<2x32xf32> to vector<1x2x32xf32>
    tpu.vector_store %arg18[%c3, %c0_99, %c0_100], %435 {strides = array<i32>} : memref<6x2x32xf32, #tpu.memory_space<vmem>>, vector<1x2x32xf32>,
    %436 = vector.extract_strided_slice %415 {offsets = [0, 4, 0], sizes = [2, 1, 32], strides = [1, 1, 1]} : vector<2x6x32xf32> to vector<2x1x32xf32>
    %437 = vector.shape_cast %436 : vector<2x1x32xf32> to vector<2x32xf32>
    %c4 = arith.constant 4 : index
    %c0_101 = arith.constant 0 : index
    %c0_102 = arith.constant 0 : index
    %438 = vector.load %arg18[%c4, %c0_101, %c0_102] : memref<6x2x32xf32, #tpu.memory_space<vmem>>, vector<1x2x32xf32>
    %439 = vector.shape_cast %438 : vector<1x2x32xf32> to vector<2x32xf32>
    %440 = vector.shape_cast %437 : vector<2x32xf32> to vector<1x2x32xf32>
    tpu.vector_store %arg18[%c4, %c0_101, %c0_102], %440 {strides = array<i32>} : memref<6x2x32xf32, #tpu.memory_space<vmem>>, vector<1x2x32xf32>,
    %441 = vector.extract_strided_slice %415 {offsets = [0, 5, 0], sizes = [2, 1, 32], strides = [1, 1, 1]} : vector<2x6x32xf32> to vector<2x1x32xf32>
    %442 = vector.shape_cast %441 : vector<2x1x32xf32> to vector<2x32xf32>
    %c5 = arith.constant 5 : index
    %c0_103 = arith.constant 0 : index
    %c0_104 = arith.constant 0 : index
    %443 = vector.load %arg18[%c5, %c0_103, %c0_104] : memref<6x2x32xf32, #tpu.memory_space<vmem>>, vector<1x2x32xf32>
    %444 = vector.shape_cast %443 : vector<1x2x32xf32> to vector<2x32xf32>
    %445 = vector.shape_cast %442 : vector<2x32xf32> to vector<1x2x32xf32>
    tpu.vector_store %arg18[%c5, %c0_103, %c0_104], %445 {strides = array<i32>} : memref<6x2x32xf32, #tpu.memory_space<vmem>>, vector<1x2x32xf32>,
    %446 = vector.shape_cast %314 : vector<2x32xf32> to vector<1x2x32xf32>
    %447 = vector.shape_cast %339 : vector<2x32xf32> to vector<1x2x32xf32>
    %448 = tpu.concatenate %446, %447 in 0 : vector<1x2x32xf32>, vector<1x2x32xf32> -> vector<2x2x32xf32>
    %c0_105 = arith.constant 0 : index
    %c0_106 = arith.constant 0 : index
    %c0_107 = arith.constant 0 : index
    %449 = vector.load %arg19[%c0_105, %c0_106, %c0_107] : memref<2x2x32xf32, #tpu.memory_space<vmem>>, vector<2x2x32xf32>
    tpu.vector_store %arg19[%c0_105, %c0_106, %c0_107], %448 {strides = array<i32>} : memref<2x2x32xf32, #tpu.memory_space<vmem>>, vector<2x2x32xf32>,
    return
  }
}

</mosaic_0001>

<bundles_post_ra>
// kernel: tpu_custom_call.1
= control target key start
LH: loop header
LB: loop body
LE: loop exit
PB: predicated region body
PF: predicated region fallthrough
CT: control target
= control target key end

     0   :  { %s2652_s0 = inlined_call_operand.vmem [shape: s32[12,1], index: 0, kind: input, shape index: {}]   ;;  %s2653_s1 = inlined_call_operand.hbm [shape: f32[20,32], index: 1, kind: input, shape index: {}]   ;;  %s2654_s2 = inlined_call_operand.vmem [shape: f32[2,2,32], index: 2, kind: input, shape index: {}]   ;;  %s2655_s3 = inlined_call_operand.vmem [shape: f32[2,8,32], index: 3, kind: input, shape index: {}]   ;;  %s2656_s4 = inlined_call_operand.vmem [shape: f32[2,32,8], index: 4, kind: input, shape index: {}]   ;;  %s2657_s5 = inlined_call_operand.vmem [shape: f32[32,32], index: 5, kind: input, shape index: {}]   ;;  %s2658_s6 = inlined_call_operand.vmem [shape: f32[32,32], index: 6, kind: input, shape index: {}]   ;;  %s2659_s7 = inlined_call_operand.hbm [shape: f32[32,32], index: 7, kind: input, shape index: {}]   ;;  %s2660_s8 = inlined_call_operand.hbm [shape: f32[32,96], index: 8, kind: input, shape index: {}]   ;;  %s2661_s9 = inlined_call_operand.hbm [shape: f32[32,96], index: 9, kind: input, shape index: {}]   ;;  %s2662_s10 = inlined_call_operand.vmem [shape: f32[1,64], index: 10, kind: input, shape index: {}]   ;;  %s2663_s11 = inlined_call_operand.vmem [shape: f32[1,32], index: 11, kind: input, shape index: {}]   ;;  %s2664_s12 = inlined_call_operand.vmem [shape: f32[1,32], index: 12, kind: input, shape index: {}]   ;;  %s2665_s13 = inlined_call_operand.hbm [shape: f32[32,96], index: 13, kind: input, shape index: {}]   ;;  %s2666_s14 = inlined_call_operand.hbm [shape: f32[32,96], index: 14, kind: input, shape index: {}]   ;;  %s2667_s15 = inlined_call_operand.vmem [shape: f32[1,64], index: 15, kind: input, shape index: {}]   ;;  %s2668_s16 = inlined_call_operand.vmem [shape: f32[1,32], index: 16, kind: input, shape index: {}]   ;;  %s2669_s17 = inlined_call_operand.vmem [shape: f32[1,32], index: 17, kind: input, shape index: {}]   ;;  %s2670_s18 = inlined_call_operand.hbm [shape: f32[6,2,32], index: 18, kind: output, shape index: {0}]   ;;  %s2671_s19 = inlined_call_operand.hbm [shape: f32[2,2,32], index: 19, kind: output, shape index: {1}]  }
   0x1   :  { %2675 = sst [smem:[#allocation22_spill]] %s2652_s0 }
   0x2   :  { %2676 = sst [smem:[#allocation23_spill]] %s2653_s1 }
   0x3   :  { %2677 = sst [smem:[#allocation24_spill]] %s2654_s2 }
   0x4   :  { %2678 = sst [smem:[#allocation25_spill]] %s2655_s3 }
   0x5   :  { %25 = vsyncpa [#allocation3], 0 }
   0x6   :  { %26 = vsyncpa [#allocation6], 0 }
   0x7   :  { %27 = vsyncpa [#allocation9], 0 }
   0x8   :  { %28 = vsyncpa [#allocation12], 0 }
   0x9   :  { %29 = vsyncpa [#allocation4], 0 }
   0xa   :  { %30 = vsyncpa [#allocation15], 0  ;;  %s60_s20 = sshll.u32 %s2659_s7, 4  ;;  %s2060_s21 = smov [#allocation5]   ;;  %s61_s20 = int_to_ptr.hbm [resolvable:$true] %s60_s20 }
   0xb   :  { %s62_s1 = sshll.u32 %s2060_s21, 4  ;;  %s86_s23 = sshll.u32 %s2661_s9, 4  ;;  %s63_s1 = int_to_ptr.vmem [resolvable:$true] %s62_s1  ;;  %s87_s23 = int_to_ptr.hbm [resolvable:$true] %s86_s23 }
   0xc   :  { %s2061_s24 = smov 128   ;;  %s2062_s25 = smov 8  }
   0xd   :  { %68 = dma.hbm_to_vmem [thread:$0]  %s61_s20, 512, %s63_s1, [#allocation6], %s2061_s24, %s2061_s24, %s2062_s25  }
   0xe   :  { %s2063_s3 = smov [#allocation8]   ;;  %s2679_s7 = sld [smem:[#allocation23_spill]] }
   0xf   :  { %s88_s26 = sshll.u32 %s2063_s3, 4  ;;  %s73_s30 = sshll.u32 %s2660_s8, 4  ;;  %s89_s26 = int_to_ptr.vmem [resolvable:$true] %s88_s26  ;;  %s74_s30 = int_to_ptr.hbm [resolvable:$true] %s73_s30 }
  0x10   :  { %94 = dma.hbm_to_vmem [thread:$0]  %s87_s23, 512, %s89_s26, [#allocation9], %s2061_s24, %s2061_s24, %s2062_s25  }
  0x11   :  { %s2064_s21 = smov [#allocation2]   ;;  %s2065_s20 = smov [#allocation7]  }
  0x12   :  { %s39_s22 = sshll.u32 %s2064_s21, 4  ;;  %s75_s1 = sshll.u32 %s2065_s20, 4  ;;  %s40_s22 = int_to_ptr.vmem [resolvable:$true] %s39_s22  ;;  %s76_s1 = int_to_ptr.vmem [resolvable:$true] %s75_s1 }
  0x13   :  { %s105_s27 = sshll.u32 %s2665_s13, 4  ;;  %s118_s26 = sshll.u32 %s2666_s14, 4  ;;  %s106_s27 = int_to_ptr.hbm [resolvable:$true] %s105_s27  ;;  %s119_s26 = int_to_ptr.hbm [resolvable:$true] %s118_s26 }
  0x14   :  { %s37_s29 = sshll.u32 %s2679_s7, 4  ;;  %s2066_s28 = smov [#allocation10]   ;;  %s38_s29 = int_to_ptr.hbm [resolvable:$true] %s37_s29 }
  0x15   :  { %45 = dma.hbm_to_vmem [thread:$0]  %s38_s29, 384, %s40_s22, [#allocation3], %s2061_s24, %s2061_s24, %s2062_s25  }
  0x16   :  { %81 = dma.hbm_to_vmem [thread:$0]  %s74_s30, 512, %s76_s1, [#allocation6], %s2061_s24, %s2061_s24, %s2062_s25  }
  0x17   :  { %s107_s7 = sshll.u32 %s2066_s28, 4  ;;  %s2067_s29 = smov [#allocation11]   ;;  %s108_s7 = int_to_ptr.vmem [resolvable:$true] %s107_s7 }
  0x18   :  { %113 = dma.hbm_to_vmem [thread:$0]  %s106_s27, 512, %s108_s7, [#allocation9], %s2061_s24, %s2061_s24, %s2062_s25  }
  0x19   :  { %s120_s13 = sshll.u32 %s2067_s29, 4  ;;  %s121_s13 = int_to_ptr.vmem [resolvable:$true] %s120_s13 }
  0x1a   :  { %126 = dma.hbm_to_vmem [thread:$0]  %s119_s26, 512, %s121_s13, [#allocation12], %s2061_s24, %s2061_s24, %s2062_s25  }
  0x1b   :  { %2048 = dma.done.wait [#allocation3], 384  }
  0x1c   :  { %2049 = vsyncadd [#allocation3], 4294966912 }
  0x1d   :  { %2050 = dma.done.wait [#allocation6], 1024  }
  0x1e   :  { %2051 = vsyncadd [#allocation6], 4294966272 }
  0x1f   :  { %2052 = dma.done.wait [#allocation9], 1024  }
  0x20   :  { %2053 = vsyncadd [#allocation9], 4294966272 }
  0x21   :  { %2054 = dma.done.wait [#allocation12], 512  }
  0x22   :  { %2055 = vsyncadd [#allocation12], 4294966784  ;;  %v2068_v0 = vmov 0   ;;  %vm241_vm0 = vcmask 1043456   ;;  %s2680_s0 = sld [smem:[#allocation22_spill]]  ;;  %v2215_v2 = vld [vmem:[#allocation8 + $0x18] sm:$0xff]  ;;  %v220_v14 = vlaneseq }
  0x23   :  { %1763 = vset.pattern.permute.xlu0 %v2068_v0  ;;  %1764 = vset.pattern.permute.xlu1 %v2068_v0  ;;  %v2217_v3 = vld [vmem:[#allocation8 + $0x10] sm:$0xff]  ;;  %v159_v4 = vld [vmem:[#allocation2 + $0x10] sm:$0xf]  ;;  %v2220_v5 = vld [vmem:[#allocation8 + $0x8] sm:$0xff]  ;;  %vm268_vm1 = vcmask 261120   ;;  %s2681_s30 = sld [smem:[#allocation24_spill]] }
  0x24   :  { %316 = vmatpush.msra.mxu2 %v2215_v2  ;;  %1701 = vmatpush.msk.msra.mxu0 %vm241_vm0, %v159_v4  ;;  %v2223_v6 = vld [vmem:[#allocation8] sm:$0xff]  ;;  %v158_v8 = vld [vmem:[#allocation2 + $0x8] sm:$0xff]  ;;  %v157_v9 = vld [vmem:[#allocation2] sm:$0xff]  ;;  %s2069_s20 = smov 64   ;;  %v2236_v15 = vand.u32 127, %v220_v14  ;;  %vm234_vm2 = vcmask 162816  }
  0x25   :  { %v1765_v10 = vld [vmem:[%s2664_s12] ss:$0 sm:$0xff]  ;;  %v185_v11 = vld [vmem:[#allocation7 + $0x18] sm:$0xff]  ;;  %v184_v12 = vld [vmem:[#allocation7 + $0x10] sm:$0xff]  ;;  %v2070_v17 = vmov 0.0   ;;  %s2071_s12 = smov 32  }
  0x26   :  { %317 = vmatpush.msra.mxu2 %v2217_v3  ;;  %259 = vmatpush.msra.mxu0 %v158_v8  ;;  %v183_v13 = vld [vmem:[#allocation7 + $0x8] sm:$0xff]  ;;  %v182_v19 = vld [vmem:[#allocation7] sm:$0xff]  ;;  %v2269_v49 = vld [vmem:[#allocation11 + $0x18] sm:$0xff]  ;;  %s2682_s9 = sld [smem:[#allocation25_spill]]  ;;  %s2073_s2 = smov [#allocation14]  }
  0x27   :  { %287 = vmatpush.msra.mxu1 %v185_v11  ;;  %v1766_v23 = vld [vmem:[%s2663_s11] ss:$0 sm:$0xff]  ;;  %s2072_s11 = smov 96   ;;  %v2271_v50 = vld [vmem:[#allocation11 + $0x10] sm:$0xff]  ;;  %v2280_v53 = vld [vmem:[#allocation10 + $0x18] sm:$0xff]  ;;  %s1676_s3 = sshll.u32 %s2073_s2, 4  ;;  %s1677_s3 = int_to_ptr.vmem [resolvable:$true] %s1676_s3 }
  0x28   :  { %v218_v1 = vld [vmem:[%s2680_s0] sm:$0xff]  ;;  %318 = vmatpush.msra.mxu2 %v2220_v5  ;;  %260 = vmatpush.msra.mxu0 %v157_v9  ;;  %v2284_v54 = vld [vmem:[#allocation10 + $0x10] sm:$0xff]  ;;  %v2286_v55 = vld [vmem:[#allocation11] sm:$0xff]  ;;  %s1678_s23 = sshll.u32 %s2671_s19, 4  ;;  %s1665_s7 = sshll.u32 %s2670_s18, 4  ;;  %s1679_s23 = int_to_ptr.hbm [resolvable:$true] %s1678_s23  ;;  %s1666_s7 = int_to_ptr.hbm [resolvable:$true] %s1665_s7 }
  0x29   :  { %223 = vperm.xlu0 %1763, %v218_v1   ;;  %v298_v7 = vld [vmem:[%s2681_s30] sm:$0x3]  ;;  %288 = vmatpush.msra.mxu1 %v184_v12  ;;  %v2294_v56 = vld [vmem:[%s2681_s30 + $0x2] sm:$0x3]  ;;  %v2302_v58 = vld [vmem:[#allocation10] sm:$0xff] }
  0x2a   :  { %319 = vmatpush.msra.mxu2 %v2223_v6  ;;  %v2254_v25 = vld [vmem:[%s2662_s10] ss:$0 sm:$0xff]  ;;  %392 = vmatpush.msra.mxu3 %v2280_v53  ;;  %v219_v1 = vld [vmem:[%s2680_s0 + $0x8] sm:$0xf] }
  0x2b   :  { %1707 = vmatmul.msk.f32.vlgmr.msra.gmra.mxu2 %vm268_vm1, %v298_v7  ;;  %289 = vmatpush.msra.mxu1 %v183_v13  ;;  %v1768_v51 = vld [vmem:[%s2669_s17] ss:$0 sm:$0xff]  ;;  %s2074_s17 = smov 2  }
  0x2c   :  { %415 = vmatpush.msrb.mxu2 %v2269_v49  ;;  %v2278_v52 = vld [vmem:[#allocation11 + $0x8] sm:$0xff]  ;;  %559 = vmatpush.msrb.mxu0 %v2280_v53 }
  0x2d   :  { %290 = vmatpush.msra.mxu1 %v182_v19  ;;  %v2296_v57 = vld [vmem:[#allocation10 + $0x8] sm:$0xff]  ;;  %393 = vmatpush.msra.mxu3 %v2284_v54 }
  0x2e   :  { %416 = vmatpush.msrb.mxu2 %v2271_v50  ;;  %560 = vmatpush.msrb.mxu0 %v2284_v54  ;;  %v1769_v4 = vld [vmem:[%s2668_s16] ss:$0 sm:$0xff] }
  0x2f   :  { %584 = vmatpush.msrb.mxu1 %v2269_v49  ;;  %394 = vmatpush.msra.mxu3 %v2296_v57  ;;  %v2363_v13 = vld [vmem:[%s2667_s15] ss:$0 sm:$0xff] }
  0x30   :  { %417 = vmatpush.msrb.mxu2 %v2278_v52  ;;  %561 = vmatpush.msrb.mxu0 %v2296_v57 }
  0x31   :  { %349 = vrot.lane.b32.xlu0 %v1765_v10, %s2069_s20  ;;  %585 = vmatpush.msrb.mxu1 %v2271_v50 }
  0x32   :  { %418 = vmatpush.msrb.mxu2 %v2286_v55  ;;  %395 = vmatpush.msra.mxu3 %v2302_v58 }
  0x33   :  { %586 = vmatpush.msrb.mxu1 %v2278_v52  ;;  %1710 = vmatmul.msk.f32.vlgmr.msrb.gmra.mxu2 %vm268_vm1, %v2294_v56 }
  0x34   :  { %646 = vmatpush.msra.mxu2 %v2215_v2  ;;  %486 = vmatpush.msrb.mxu3 %v2215_v2 }
  0x35   :  { %587 = vmatpush.msrb.mxu1 %v2286_v55  ;;  %562 = vmatpush.msrb.mxu0 %v2302_v58 }
  0x36   :  { %647 = vmatpush.msra.mxu2 %v2217_v3  ;;  %487 = vmatpush.msrb.mxu3 %v2217_v3 }
  0x38   :  { %648 = vmatpush.msra.mxu2 %v2220_v5  ;;  %488 = vmatpush.msrb.mxu3 %v2220_v5 }
  0x39   :  { %370 = vrot.lane.b32.xlu0 %v298_v7, %s2071_s12 }
  0x3a   :  { %649 = vmatpush.msra.mxu2 %v2223_v6  ;;  %489 = vmatpush.msrb.mxu3 %v2223_v6 }
  0x3c   :  { %879 = vmatpush.msrb.mxu2 %v2280_v53 }
  0x3e   :  { %880 = vmatpush.msrb.mxu2 %v2284_v54 }
  0x40   :  { %881 = vmatpush.msrb.mxu2 %v2296_v57 }
  0x42   :  { %882 = vmatpush.msrb.mxu2 %v2302_v58 }
  0x9b   :  { %v224_v16 = vpop.permute.xlu0 %223 }
  0x9c   :  { %vm228_vm3 = vcmp.eq.s32.totalorder %v224_v16, %v2236_v15 }
  0x9d   :  { %v1699_v18 = vsel %vm228_vm3, 1.0, %v2070_v17 }
  0x9e   :  { %1702 = vmatmul.msk.f32.vlgmr.msra.gmra.mxu0 %vm234_vm2, %v1699_v18 }
  0x9f   :  { %744 = vmatpush.msra.mxu0 %v2269_v49 }
  0xa1   :  { %745 = vmatpush.msra.mxu0 %v2271_v50 }
  0xa3   :  { %v2242_v20 = vpop.permute.xlu0 %349  ;;  %746 = vmatpush.msra.mxu0 %v2278_v52 }
  0xa5   :  { %747 = vmatpush.msra.mxu0 %v2286_v55 }
  0xab   :  { %v371_v59 = vpop.permute.xlu0 %370 }
  0xae   :  { %v321_v21 = vpop.f32.mrf.mxu2 }
  0xaf   :  { %v352_v22 = vadd.f32 %v2242_v20, %v321_v21 }
  0xb1   :  { %354 = vrot.lane.b32.xlu1 %v352_v22, %s2069_s20 }
  0xb6   :  { %v420_v9 = vpop.f32.mrf.mxu2 }
  0xb9   :  { %345 = vrot.lane.b32.xlu1 %v1766_v23, %s2069_s20 }
 0x11b   :  { %v262_v24 = vpop.f32.mrf.mxu0 }
 0x11c   :  { %1704 = vmatmul.msk.f32.vlgmr.msra.gmra.mxu1 %vm268_vm1, %v262_v24 }
 0x11d   :  { %806 = vmatpush.msra.mxu1 %v2215_v2 }
 0x11f   :  { %807 = vmatpush.msra.mxu1 %v2217_v3 }
 0x121   :  { %808 = vmatpush.msra.mxu1 %v2220_v5 }
 0x123   :  { %v355_v41 = vpop.permute.xlu1 %354  ;;  %809 = vmatpush.msra.mxu1 %v2223_v6 }
 0x12b   :  { %v2261_v44 = vpop.permute.xlu1 %345 }
 0x199   :  { %v2256_v26 = vpop.f32.mrf.mxu1 }
 0x19a   :  { %v324_v27 = vadd.f32 %v321_v21, %v2256_v26  ;;  %v2265_v45 = vadd.f32 %v2261_v44, %v2256_v26 }
 0x19c   :  { %v325_v28 = vadd.f32 %v2254_v25, %v324_v27 }
 0x19e   :  { %v1708_v29 = vmul.f32 -1.442695, %v325_v28 }
 0x1a0   :  { %1771 = vpow2.f32 %v1708_v29 }
 0x1a6   :  { %v1772_v30 = vpop.eup %1771 }
 0x1a7   :  { %v329_v31 = vadd.f32 1.0, %v1772_v30 }
 0x1a9   :  { %1773 = vrcp.f32 %v329_v31  ;;  %v341_v35 = vand.u32 2147483648, %v329_v31  ;;  %v339_v37 = vand.u32 2147483647, %v329_v31  ;;  %vm335_vm5 = vweird.f32 %v329_v31 }
 0x1ab   :  { %v342_v39 = vor.u32 1.1754944e-38, %v341_v35  ;;  %vm340_vm7 = vcmp.eq.f32.partialorder %v339_v37, 8.507059e+37 }
 0x1af   :  { %v1774_v32 = vpop.eup %1773 }
 0x1b0   :  { %v331_v33 = vmul.f32 %v1774_v32, %v329_v31  ;;  %vm336_vm4 = vweird.f32 %v1774_v32 }
 0x1b1   :  { %vm337_vm6 = vmor %vm335_vm5, %vm336_vm4 }
 0x1b2   :  { %v332_v34 = vsub.f32 1.0, %v331_v33 }
 0x1b4   :  { %v333_v36 = vmul.f32 %v1774_v32, %v332_v34 }
 0x1b6   :  { %v334_v38 = vadd.f32 %v1774_v32, %v333_v36 }
 0x1b8   :  { %v338_v40 = vsel %vm337_vm6, %v1774_v32, %v334_v38 }
 0x1b9   :  { %v343_v42 = vsel %vm340_vm7, %v342_v39, %v338_v40 }
 0x1ba   :  { %v357_v43 = vmul.f32 %v355_v41, %v343_v42  ;;  %v364_v60 = vsub.f32 1.0, %v343_v42  ;;  %v373_v62 = vmul.f32 %v371_v59, %v343_v42 }
 0x1bc   :  { %359 = vrot.lane.b32.xlu2 %v357_v43, %s2069_s20 }
 0x216   :  { %v360_v46 = vpop.permute.xlu2 %359 }
 0x217   :  { %v362_v47 = vadd.f32 %v360_v46, %v2265_v45 }
 0x219   :  { %1775 = vtanh.f32 %v362_v47 }
 0x21f   :  { %v1776_v48 = vpop.eup %1775 }
 0x220   :  { %366 = vrot.lane.b32.xlu2 %v1776_v48, %s2072_s11 }
 0x228   :  { %448 = vrot.lane.b32.xlu2 %v1768_v51, %s2069_s20 }
 0x27a   :  { %v367_v61 = vpop.permute.xlu2 %366 }
 0x27b   :  { %v369_v63 = vmul.f32 %v367_v61, %v364_v60 }
 0x27d   :  { %v2331_v0 = vadd.f32 %v373_v62, %v369_v63 }
 0x27f   :  { %376 = vrot.lane.b32.xlu1 %v2331_v0, %s2072_s11 }
 0x282   :  { %v2343_v7 = vpop.permute.xlu2 %448 }
 0x283   :  { %v451_v10 = vadd.f32 %v2343_v7, %v420_v9 }
 0x285   :  { %453 = vrot.lane.b32.xlu2 %v451_v10, %s2069_s20 }
 0x287   :  { %226 = vperm.xlu1 %1764, %v219_v1  }
 0x28f   :  { %444 = vrot.lane.b32.xlu1 %v1769_v4, %s2069_s20 }
 0x2df   :  { %v454_v36 = vpop.permute.xlu2 %453 }
 0x2f1   :  { %v377_v8 = vpop.permute.xlu1 %376 }
 0x2f2   :  { %1709 = vmatmul.msk.f32.vlgmr.msra.gmra.mxu3 %vm268_vm1, %v377_v8 }
 0x2f3   :  { %719 = vmatpush.msra.mxu3 %v2280_v53 }
 0x2f5   :  { %720 = vmatpush.msra.mxu3 %v2284_v54 }
 0x2f7   :  { %721 = vmatpush.msra.mxu3 %v2296_v57 }
 0x2f9   :  { %v227_v11 = vpop.permute.xlu1 %226  ;;  %722 = vmatpush.msra.mxu3 %v2302_v58 }
 0x2fa   :  { %vm229_vm8 = vcmp.eq.s32.totalorder %v227_v11, %v2236_v15  ;;  %1712 = vmatmul.msk.f32.vlgmr.msrb.gmra.mxu3 %vm268_vm1, %v377_v8 }
 0x2fb   :  { %v1700_v12 = vsel %vm229_vm8, 1.0, %v2070_v17  ;;  %904 = vmatpush.msrb.mxu3 %v2269_v49 }
 0x2fc   :  { %1703 = vmatmul.msk.f32.gmra.mxu0 %vm234_vm2, %v1700_v12 }
 0x2fd   :  { %905 = vmatpush.msrb.mxu3 %v2271_v50 }
 0x2ff   :  { %906 = vmatpush.msrb.mxu3 %v2278_v52 }
 0x301   :  { %907 = vmatpush.msrb.mxu3 %v2286_v55  ;;  %v2374_v62 = vpop.permute.xlu1 %444 }
 0x375   :  { %v397_v15 = vpop.f32.mrf.mxu3 }
 0x376   :  { %v423_v16 = vadd.f32 %v420_v9, %v397_v15  ;;  %v447_v1 = vadd.f32 %v2374_v62, %v397_v15 }
 0x378   :  { %v424_v18 = vadd.f32 %v2363_v13, %v423_v16 }
 0x379   :  { %v265_v17 = vpop.f32.mrf.mxu0 }
 0x37a   :  { %v1711_v19 = vmul.f32 -1.442695, %v424_v18  ;;  %1705 = vmatmul.msk.f32.gmra.mxu1 %vm268_vm1, %v265_v17 }
 0x37c   :  { %1777 = vpow2.f32 %v1711_v19 }
 0x37d   :  { %v491_v21 = vpop.f32.mrf.mxu3 }
 0x37e   :  { %v518_v22 = vadd.f32 %v491_v21, %v2242_v20  ;;  %v495_v40 = vrot.slane %v491_v21, 6 }
 0x380   :  { %v520_v23 = vrot.slane %v518_v22, 6  ;;  %v497_v41 = vadd.f32 %v495_v40, %v2256_v26 }
 0x382   :  { %v1778_v24 = vpop.eup %1777  ;;  %521 = vrot.lane.b32.xlu0 %v520_v23, %s2069_s20  ;;  %v498_v42 = vadd.f32 %v2254_v25, %v497_v41 }
 0x383   :  { %v428_v27 = vadd.f32 1.0, %v1778_v24 }
 0x384   :  { %v1713_v43 = vmul.f32 -1.442695, %v498_v42 }
 0x385   :  { %1779 = vrcp.f32 %v428_v27  ;;  %v440_v31 = vand.u32 2147483648, %v428_v27  ;;  %v438_v33 = vand.u32 2147483647, %v428_v27  ;;  %vm434_vm10 = vweird.f32 %v428_v27 }
 0x386   :  { %1781 = vpow2.f32 %v1713_v43 }
 0x387   :  { %v441_v35 = vor.u32 1.1754944e-38, %v440_v31  ;;  %vm439_vm12 = vcmp.eq.f32.partialorder %v438_v33, 8.507059e+37 }
 0x38b   :  { %v1780_v28 = vpop.eup %1779 }
 0x38c   :  { %v430_v29 = vmul.f32 %v1780_v28, %v428_v27  ;;  %vm435_vm9 = vweird.f32 %v1780_v28  ;;  %v1782_v46 = vpop.eup %1781 }
 0x38d   :  { %vm436_vm11 = vmor %vm434_vm10, %vm435_vm9  ;;  %v502_v47 = vadd.f32 1.0, %v1782_v46 }
 0x38e   :  { %v431_v30 = vsub.f32 1.0, %v430_v29  ;;  %v537_v29 = vrot.slane %v2331_v0, 6 }
 0x38f   :  { %1783 = vrcp.f32 %v502_v47  ;;  %v514_v63 = vand.u32 2147483648, %v502_v47  ;;  %vm508_vm14 = vweird.f32 %v502_v47 }
 0x390   :  { %v432_v32 = vmul.f32 %v1780_v28, %v431_v30 }
 0x391   :  { %v515_v9 = vor.u32 1.1754944e-38, %v514_v63 }
 0x392   :  { %v433_v34 = vadd.f32 %v1780_v28, %v432_v32 }
 0x394   :  { %v437_v37 = vsel %vm436_vm11, %v1780_v28, %v433_v34 }
 0x395   :  { %v442_v38 = vsel %vm439_vm12, %v441_v35, %v437_v37  ;;  %v1784_v48 = vpop.eup %1783 }
 0x396   :  { %v456_v39 = vmul.f32 %v454_v36, %v442_v38  ;;  %v504_v51 = vmul.f32 %v1784_v48, %v502_v47  ;;  %vm509_vm13 = vweird.f32 %v1784_v48  ;;  %v463_v15 = vsub.f32 1.0, %v442_v38 }
 0x397   :  { %vm510_vm15 = vmor %vm508_vm14, %vm509_vm13 }
 0x398   :  { %458 = vrot.lane.b32.xlu2 %v456_v39, %s2069_s20  ;;  %v505_v59 = vsub.f32 1.0, %v504_v51 }
 0x39a   :  { %v506_v60 = vmul.f32 %v1784_v48, %v505_v59 }
 0x39c   :  { %v507_v61 = vadd.f32 %v1784_v48, %v506_v60 }
 0x39e   :  { %v511_v4 = vsel %vm510_vm15, %v1784_v48, %v507_v61 }
 0x3a0   :  { %469 = vrot.lane.b32.xlu2 %v2294_v56, %s2071_s12  ;;  %v512_v56 = vand.u32 2147483647, %v502_v47 }
 0x3a2   :  { %vm513_vm0 = vcmp.eq.f32.partialorder %v512_v56, 8.507059e+37 }
 0x3a3   :  { %v516_v12 = vsel %vm513_vm0, %v515_v9, %v511_v4 }
 0x3a4   :  { %v531_v30 = vsub.f32 1.0, %v516_v12  ;;  %v539_v34 = vmul.f32 %v537_v29, %v516_v12 }
 0x3f2   :  { %v459_v8 = vpop.permute.xlu2 %458 }
 0x3f3   :  { %v461_v10 = vadd.f32 %v459_v8, %v447_v1 }
 0x3f4   :  { %v522_v11 = vpop.permute.xlu0 %521 }
 0x3f5   :  { %1785 = vtanh.f32 %v461_v10  ;;  %v524_v16 = vmul.f32 %v522_v11, %v516_v12 }
 0x3f7   :  { %526 = vrot.lane.b32.xlu0 %v524_v16, %s2069_s20  ;;  %v2395_v0 = vpop.f32.mrf.mxu1 }
 0x3fa   :  { %v470_v21 = vpop.permute.xlu2 %469 }
 0x3fb   :  { %v1786_v18 = vpop.eup %1785  ;;  %v472_v23 = vmul.f32 %v470_v21, %v442_v38 }
 0x3fc   :  { %465 = vrot.lane.b32.xlu1 %v1786_v18, %s2072_s11 }
 0x469   :  { %v527_v17 = vpop.permute.xlu0 %526 }
 0x46a   :  { %v529_v19 = vadd.f32 %v527_v17, %v2265_v45 }
 0x46c   :  { %1787 = vtanh.f32 %v529_v19 }
 0x46e   :  { %v466_v22 = vpop.permute.xlu1 %465 }
 0x46f   :  { %v468_v24 = vmul.f32 %v466_v22, %v463_v15 }
 0x471   :  { %v2380_v27 = vadd.f32 %v472_v23, %v468_v24 }
 0x472   :  { %v1788_v28 = vpop.eup %1787 }
 0x473   :  { %533 = vrot.lane.b32.xlu0 %v1788_v28, %s2072_s11  ;;  %568 = vrot.lane.b32.xlu1 %v2380_v27, %s2072_s11 }
 0x4e5   :  { %v534_v31 = vpop.permute.xlu0 %533  ;;  %v569_v32 = vpop.permute.xlu1 %568 }
 0x4e6   :  { %v536_v33 = vmul.f32 %v534_v31, %v531_v30  ;;  %1715 = vmatmul.msk.f32.vlgmr.msrb.gmra.mxu1 %vm268_vm1, %v569_v32 }
 0x4e7   :  { %1034 = vmatpush.msrb.mxu1 %v2280_v53 }
 0x4e8   :  { %v2388_v35 = vadd.f32 %v539_v34, %v536_v33 }
 0x4e9   :  { %1035 = vmatpush.msrb.mxu1 %v2284_v54 }
 0x4ea   :  { %v542_v36 = vrot.slane %v2388_v35, 2 }
 0x4eb   :  { %1036 = vmatpush.msrb.mxu1 %v2296_v57 }
 0x4ec   :  { %543 = vrot.lane.b32.xlu0 %v542_v36, %s2072_s11 }
 0x4ed   :  { %1037 = vmatpush.msrb.mxu1 %v2302_v58 }
 0x55e   :  { %v544_v37 = vpop.permute.xlu0 %543 }
 0x55f   :  { %1714 = vmatmul.msk.f32.vlgmr.msrb.gmra.mxu0 %vm268_vm1, %v544_v37  ;;  %1717 = vmatmul.msk.f32.vlgmr.msra.gmra.mxu2 %vm268_vm1, %v544_v37 }
 0x560   :  { %966 = vmatpush.msrb.mxu0 %v2215_v2  ;;  %1059 = vmatpush.msra.mxu2 %v2269_v49 }
 0x562   :  { %967 = vmatpush.msrb.mxu0 %v2217_v3  ;;  %1060 = vmatpush.msra.mxu2 %v2271_v50 }
 0x563   :  { %v589_v38 = vpop.f32.mrf.mxu1 }
 0x564   :  { %v614_v39 = vadd.f32 %v589_v38, %v2343_v7  ;;  %968 = vmatpush.msrb.mxu0 %v2220_v5  ;;  %1061 = vmatpush.msra.mxu2 %v2278_v52 }
 0x566   :  { %616 = vrot.lane.b32.xlu2 %v614_v39, %s2069_s20  ;;  %969 = vmatpush.msrb.mxu0 %v2223_v6 }
 0x567   :  { %1062 = vmatpush.msra.mxu2 %v2286_v55 }
 0x5c0   :  { %v617_v11 = vpop.permute.xlu2 %616 }
 0x5dc   :  { %v564_v40 = vpop.f32.mrf.mxu0 }
 0x5dd   :  { %v592_v41 = vadd.f32 %v589_v38, %v564_v40  ;;  %v613_v39 = vadd.f32 %v564_v40, %v2374_v62  ;;  %v697_v40 = vrot.slane %v2388_v35, 6 }
 0x5df   :  { %v593_v42 = vadd.f32 %v2363_v13, %v592_v41 }
 0x5e1   :  { %v1716_v43 = vmul.f32 -1.442695, %v593_v42 }
 0x5e2   :  { %v651_v46 = vpop.f32.mrf.mxu2 }
 0x5e3   :  { %1789 = vpow2.f32 %v1716_v43  ;;  %v678_v47 = vadd.f32 %v651_v46, %v2242_v20  ;;  %v655_v18 = vrot.slane %v651_v46, 4 }
 0x5e5   :  { %v680_v48 = vrot.slane %v678_v47, 4  ;;  %v657_v17 = vadd.f32 %v655_v18, %v2256_v26 }
 0x5e7   :  { %681 = vrot.lane.b32.xlu0 %v680_v48, %s2069_s20  ;;  %v658_v19 = vadd.f32 %v2254_v25, %v657_v17 }
 0x5e9   :  { %v1790_v51 = vpop.eup %1789  ;;  %v1718_v21 = vmul.f32 -1.442695, %v658_v19 }
 0x5ea   :  { %v597_v59 = vadd.f32 1.0, %v1790_v51 }
 0x5ec   :  { %1791 = vrcp.f32 %v597_v59  ;;  %v609_v56 = vand.u32 2147483648, %v597_v59  ;;  %v607_v4 = vand.u32 2147483647, %v597_v59  ;;  %vm603_vm3 = vweird.f32 %v597_v59 }
 0x5ed   :  { %1793 = vpow2.f32 %v1718_v21 }
 0x5ee   :  { %v610_v9 = vor.u32 1.1754944e-38, %v609_v56  ;;  %vm608_vm5 = vcmp.eq.f32.partialorder %v607_v4, 8.507059e+37 }
 0x5f2   :  { %v1792_v60 = vpop.eup %1791 }
 0x5f3   :  { %v599_v61 = vmul.f32 %v1792_v60, %v597_v59  ;;  %vm604_vm2 = vweird.f32 %v1792_v60  ;;  %v1794_v15 = vpop.eup %1793 }
 0x5f4   :  { %vm605_vm4 = vmor %vm603_vm3, %vm604_vm2  ;;  %v662_v22 = vadd.f32 1.0, %v1794_v15 }
 0x5f5   :  { %v600_v63 = vsub.f32 1.0, %v599_v61 }
 0x5f6   :  { %1795 = vrcp.f32 %v662_v22  ;;  %v674_v31 = vand.u32 2147483648, %v662_v22  ;;  %vm668_vm7 = vweird.f32 %v662_v22  ;;  %v672_v32 = vand.u32 2147483647, %v662_v22 }
 0x5f7   :  { %v601_v1 = vmul.f32 %v1792_v60, %v600_v63 }
 0x5f8   :  { %v675_v34 = vor.u32 1.1754944e-38, %v674_v31  ;;  %vm673_vm9 = vcmp.eq.f32.partialorder %v672_v32, 8.507059e+37 }
 0x5f9   :  { %v602_v8 = vadd.f32 %v1792_v60, %v601_v1 }
 0x5fb   :  { %v606_v10 = vsel %vm605_vm4, %v1792_v60, %v602_v8 }
 0x5fc   :  { %v611_v12 = vsel %vm608_vm5, %v610_v9, %v606_v10  ;;  %v1796_v23 = vpop.eup %1795 }
 0x5fd   :  { %v619_v16 = vmul.f32 %v617_v11, %v611_v12  ;;  %v664_v24 = vmul.f32 %v1796_v23, %v662_v22  ;;  %vm669_vm6 = vweird.f32 %v1796_v23  ;;  %v626_v51 = vsub.f32 1.0, %v611_v12 }
 0x5fe   :  { %vm670_vm8 = vmor %vm668_vm7, %vm669_vm6  ;;  %v632_v60 = vmul.f32 %v611_v12, %v2380_v27 }
 0x5ff   :  { %621 = vrot.lane.b32.xlu1 %v619_v16, %s2069_s20  ;;  %v665_v28 = vsub.f32 1.0, %v664_v24 }
 0x601   :  { %v666_v29 = vmul.f32 %v1796_v23, %v665_v28 }
 0x603   :  { %v667_v30 = vadd.f32 %v1796_v23, %v666_v29 }
 0x605   :  { %v671_v33 = vsel %vm670_vm8, %v1796_v23, %v667_v30 }
 0x606   :  { %v676_v37 = vsel %vm673_vm9, %v675_v34, %v671_v33 }
 0x607   :  { %v691_v56 = vsub.f32 1.0, %v676_v37  ;;  %v699_v4 = vmul.f32 %v697_v40, %v676_v37 }
 0x659   :  { %v682_v36 = vpop.permute.xlu0 %681 }
 0x65a   :  { %v684_v38 = vmul.f32 %v682_v36, %v676_v37 }
 0x65c   :  { %686 = vrot.lane.b32.xlu2 %v684_v38, %s2069_s20 }
 0x671   :  { %v622_v41 = vpop.permute.xlu1 %621 }
 0x672   :  { %v624_v42 = vadd.f32 %v622_v41, %v613_v39 }
 0x674   :  { %1797 = vtanh.f32 %v624_v42 }
 0x67a   :  { %v1798_v43 = vpop.eup %1797 }
 0x67b   :  { %628 = vrot.lane.b32.xlu0 %v1798_v43, %s2072_s11 }
 0x6b6   :  { %v687_v46 = vpop.permute.xlu2 %686 }
 0x6b7   :  { %v689_v47 = vadd.f32 %v687_v46, %v2265_v45 }
 0x6b9   :  { %1799 = vtanh.f32 %v689_v47 }
 0x6bf   :  { %v1800_v48 = vpop.eup %1799 }
 0x6c0   :  { %693 = vrot.lane.b32.xlu1 %v1800_v48, %s2072_s11 }
 0x6ed   :  { %v629_v59 = vpop.permute.xlu0 %628 }
 0x6ee   :  { %v631_v61 = vmul.f32 %v629_v59, %v626_v51 }
 0x6f0   :  { %v2421_v63 = vadd.f32 %v632_v60, %v631_v61 }
 0x6f2   :  { %728 = vrot.lane.b32.xlu2 %v2421_v63, %s2072_s11 }
 0x732   :  { %v694_v1 = vpop.permute.xlu1 %693 }
 0x733   :  { %v696_v8 = vmul.f32 %v694_v1, %v691_v56 }
 0x735   :  { %v2426_v9 = vadd.f32 %v699_v4, %v696_v8 }
 0x737   :  { %v702_v10 = vrot.slane %v2426_v9, 4  ;;  %v857_v32 = vrot.slane %v2426_v9, 6 }
 0x739   :  { %703 = vrot.lane.b32.xlu0 %v702_v10, %s2072_s11 }
 0x74c   :  { %v729_v11 = vpop.permute.xlu2 %728 }
 0x74d   :  { %1720 = vmatmul.msk.f32.vlgmr.msra.gmra.mxu0 %vm268_vm1, %v729_v11 }
 0x74e   :  { %1194 = vmatpush.msra.mxu0 %v2280_v53 }
 0x750   :  { %1195 = vmatpush.msra.mxu0 %v2284_v54 }
 0x752   :  { %1196 = vmatpush.msra.mxu0 %v2296_v57 }
 0x754   :  { %1197 = vmatpush.msra.mxu0 %v2302_v58 }
 0x7ab   :  { %v704_v35 = vpop.permute.xlu0 %703 }
 0x7ac   :  { %1719 = vmatmul.msk.f32.vlgmr.msra.gmra.mxu3 %vm268_vm1, %v704_v35  ;;  %1722 = vmatmul.msk.f32.vlgmr.msra.gmra.mxu1 %vm268_vm1, %v704_v35 }
 0x7ad   :  { %1121 = vmatpush.msra.mxu3 %v2215_v2  ;;  %1219 = vmatpush.msra.mxu1 %v2269_v49 }
 0x7af   :  { %1122 = vmatpush.msra.mxu3 %v2217_v3  ;;  %1220 = vmatpush.msra.mxu1 %v2271_v50 }
 0x7b1   :  { %1123 = vmatpush.msra.mxu3 %v2220_v5  ;;  %1221 = vmatpush.msra.mxu1 %v2278_v52 }
 0x7b3   :  { %1124 = vmatpush.msra.mxu3 %v2223_v6  ;;  %1222 = vmatpush.msra.mxu1 %v2286_v55 }
 0x7ca   :  { %v749_v53 = vpop.f32.mrf.mxu0 }
 0x7cb   :  { %v774_v54 = vadd.f32 %v749_v53, %v2343_v7 }
 0x7cd   :  { %776 = vrot.lane.b32.xlu1 %v774_v54, %s2069_s20 }
 0x829   :  { %v811_v2 = vpop.f32.mrf.mxu1 }
 0x82a   :  { %v815_v57 = vrot.slane %v811_v2, 2  ;;  %v838_v49 = vadd.f32 %v811_v2, %v2242_v20 }
 0x82c   :  { %v817_v3 = vadd.f32 %v815_v57, %v2256_v26  ;;  %v840_v50 = vrot.slane %v838_v49, 2 }
 0x82e   :  { %v818_v5 = vadd.f32 %v2254_v25, %v817_v3  ;;  %841 = vrot.lane.b32.xlu2 %v840_v50, %s2069_s20 }
 0x82f   :  { %v724_v52 = vpop.f32.mrf.mxu3 }
 0x830   :  { %v1723_v6 = vmul.f32 -1.442695, %v818_v5  ;;  %v752_v58 = vadd.f32 %v749_v53, %v724_v52  ;;  %v773_v61 = vadd.f32 %v724_v52, %v2374_v62 }
 0x832   :  { %1801 = vpow2.f32 %v1723_v6  ;;  %v753_v55 = vadd.f32 %v2363_v13, %v752_v58 }
 0x834   :  { %v1721_v12 = vmul.f32 -1.442695, %v753_v55 }
 0x836   :  { %1803 = vpow2.f32 %v1721_v12 }
 0x838   :  { %v1802_v16 = vpop.eup %1801 }
 0x839   :  { %v822_v18 = vadd.f32 1.0, %v1802_v16 }
 0x83b   :  { %1805 = vrcp.f32 %v822_v18  ;;  %v832_v23 = vand.u32 2147483647, %v822_v18  ;;  %v834_v24 = vand.u32 2147483648, %v822_v18  ;;  %vm828_vm11 = vweird.f32 %v822_v18 }
 0x83c   :  { %v1804_v17 = vpop.eup %1803 }
 0x83d   :  { %v757_v19 = vadd.f32 1.0, %v1804_v17  ;;  %vm833_vm13 = vcmp.eq.f32.partialorder %v832_v23, 8.507059e+37  ;;  %v835_v34 = vor.u32 1.1754944e-38, %v834_v24 }
 0x83f   :  { %1807 = vrcp.f32 %v757_v19  ;;  %v769_v33 = vand.u32 2147483648, %v757_v19  ;;  %v767_v37 = vand.u32 2147483647, %v757_v19  ;;  %vm763_vm15 = vweird.f32 %v757_v19  ;;  %v777_v48 = vpop.permute.xlu1 %776 }
 0x841   :  { %v1806_v26 = vpop.eup %1805  ;;  %v770_v43 = vor.u32 1.1754944e-38, %v769_v33  ;;  %vm768_vm2 = vcmp.eq.f32.partialorder %v767_v37, 8.507059e+37 }
 0x842   :  { %v824_v21 = vmul.f32 %v1806_v26, %v822_v18  ;;  %vm829_vm10 = vweird.f32 %v1806_v26 }
 0x843   :  { %vm830_vm12 = vmor %vm828_vm11, %vm829_vm10 }
 0x844   :  { %v825_v15 = vsub.f32 1.0, %v824_v21 }
 0x845   :  { %v1808_v22 = vpop.eup %1807 }
 0x846   :  { %v759_v28 = vmul.f32 %v1808_v22, %v757_v19  ;;  %v826_v29 = vmul.f32 %v1806_v26, %v825_v15  ;;  %vm764_vm14 = vweird.f32 %v1808_v22 }
 0x847   :  { %vm765_vm0 = vmor %vm763_vm15, %vm764_vm14 }
 0x848   :  { %v760_v30 = vsub.f32 1.0, %v759_v28  ;;  %v827_v31 = vadd.f32 %v1806_v26, %v826_v29 }
 0x84a   :  { %v761_v36 = vmul.f32 %v1808_v22, %v760_v30  ;;  %v831_v38 = vsel %vm830_vm12, %v1806_v26, %v827_v31 }
 0x84b   :  { %v836_v39 = vsel %vm833_vm13, %v835_v34, %v831_v38 }
 0x84c   :  { %v762_v41 = vadd.f32 %v1808_v22, %v761_v36  ;;  %v859_v42 = vmul.f32 %v857_v32, %v836_v39  ;;  %v851_v2 = vsub.f32 1.0, %v836_v39 }
 0x84e   :  { %v766_v46 = vsel %vm765_vm0, %v1808_v22, %v762_v41 }
 0x84f   :  { %v771_v47 = vsel %vm768_vm2, %v770_v43, %v766_v46 }
 0x850   :  { %v779_v51 = vmul.f32 %v777_v48, %v771_v47  ;;  %v786_v10 = vsub.f32 1.0, %v771_v47  ;;  %v792_v35 = vmul.f32 %v771_v47, %v2421_v63 }
 0x852   :  { %781 = vrot.lane.b32.xlu0 %v779_v51, %s2069_s20 }
 0x888   :  { %v842_v59 = vpop.permute.xlu2 %841 }
 0x889   :  { %v844_v60 = vmul.f32 %v842_v59, %v836_v39 }
 0x88b   :  { %846 = vrot.lane.b32.xlu1 %v844_v60, %s2069_s20 }
 0x8c4   :  { %v782_v40 = vpop.permute.xlu0 %781 }
 0x8c5   :  { %v784_v56 = vadd.f32 %v782_v40, %v773_v61 }
 0x8c7   :  { %1809 = vtanh.f32 %v784_v56 }
 0x8cd   :  { %v1810_v1 = vpop.eup %1809 }
 0x8ce   :  { %788 = vrot.lane.b32.xlu2 %v1810_v1, %s2072_s11 }
 0x8fd   :  { %v847_v4 = vpop.permute.xlu1 %846 }
 0x8fe   :  { %v849_v8 = vadd.f32 %v847_v4, %v2265_v45 }
 0x900   :  { %1811 = vtanh.f32 %v849_v8 }
 0x906   :  { %v1812_v9 = vpop.eup %1811 }
 0x907   :  { %853 = vrot.lane.b32.xlu0 %v1812_v9, %s2072_s11 }
 0x928   :  { %v789_v11 = vpop.permute.xlu2 %788 }
 0x929   :  { %v791_v53 = vmul.f32 %v789_v11, %v786_v10  ;;  %v2486_v10 = vadd.f32 %v2261_v44, %v2395_v0 }
 0x92b   :  { %v2460_v54 = vadd.f32 %v792_v35, %v791_v53 }
 0x92d   :  { %888 = vrot.lane.b32.xlu1 %v2460_v54, %s2072_s11 }
 0x979   :  { %v854_v57 = vpop.permute.xlu0 %853 }
 0x97a   :  { %v856_v49 = vmul.f32 %v854_v57, %v851_v2 }
 0x97c   :  { %v2464_v3 = vadd.f32 %v859_v42, %v856_v49 }
 0x97e   :  { %v862_v45 = vrot.slane %v2464_v3, 6 }
 0x980   :  { %863 = vrot.lane.b32.xlu2 %v862_v45, %s2072_s11 }
 0x99f   :  { %v889_v50 = vpop.permute.xlu1 %888 }
 0x9a0   :  { %1725 = vmatmul.msk.f32.vlgmr.msrb.gmra.mxu3 %vm268_vm1, %v889_v50 }
 0x9da   :  { %v864_v5 = vpop.permute.xlu2 %863 }
 0x9db   :  { %1724 = vmatmul.msk.f32.vlgmr.msrb.gmra.mxu2 %vm268_vm1, %v864_v5  ;;  %1727 = vmatmul.msk.f32.vlgmr.msrb.gmra.mxu0 %vm268_vm1, %v864_v5 }
 0xa23   :  { %v909_v52 = vpop.f32.mrf.mxu3 }
 0xa24   :  { %v934_v6 = vadd.f32 %v909_v52, %v2343_v7 }
 0xa26   :  { %936 = vrot.lane.b32.xlu0 %v934_v6, %s2069_s20 }
 0xa58   :  { %v971_v58 = vpop.f32.mrf.mxu0 }
 0xa59   :  { %v996_v55 = vadd.f32 %v971_v58, %v2242_v20  ;;  %v974_v32 = vadd.f32 %v971_v58, %v2395_v0 }
 0xa5b   :  { %998 = vrot.lane.b32.xlu1 %v996_v55, %s2069_s20  ;;  %v975_v37 = vadd.f32 %v2254_v25, %v974_v32 }
 0xa5d   :  { %v1728_v38 = vmul.f32 -1.442695, %v975_v37 }
 0xa5e   :  { %v884_v12 = vpop.f32.mrf.mxu2 }
 0xa5f   :  { %v912_v16 = vadd.f32 %v909_v52, %v884_v12  ;;  %v933_v1 = vadd.f32 %v884_v12, %v2374_v62 }
 0xa61   :  { %v913_v18 = vadd.f32 %v2363_v13, %v912_v16 }
 0xa63   :  { %v1726_v17 = vmul.f32 -1.442695, %v913_v18 }
 0xa65   :  { %1813 = vpow2.f32 %v1726_v17 }
 0xa6b   :  { %v1814_v19 = vpop.eup %1813 }
 0xa6c   :  { %v917_v26 = vadd.f32 1.0, %v1814_v19 }
 0xa6e   :  { %1815 = vrcp.f32 %v917_v26  ;;  %v929_v28 = vand.u32 2147483648, %v917_v26  ;;  %vm923_vm4 = vweird.f32 %v917_v26  ;;  %v927_v29 = vand.u32 2147483647, %v917_v26 }
 0xa6f   :  { %1817 = vpow2.f32 %v1728_v38 }
 0xa70   :  { %v930_v31 = vor.u32 1.1754944e-38, %v929_v28  ;;  %vm928_vm6 = vcmp.eq.f32.partialorder %v927_v29, 8.507059e+37 }
 0xa74   :  { %v1816_v21 = vpop.eup %1815 }
 0xa75   :  { %v919_v15 = vmul.f32 %v1816_v21, %v917_v26  ;;  %vm924_vm3 = vweird.f32 %v1816_v21  ;;  %v1818_v39 = vpop.eup %1817 }
 0xa76   :  { %vm925_vm5 = vmor %vm923_vm4, %vm924_vm3  ;;  %v979_v41 = vadd.f32 1.0, %v1818_v39 }
 0xa77   :  { %v920_v22 = vsub.f32 1.0, %v919_v15 }
 0xa78   :  { %1819 = vrcp.f32 %v979_v41  ;;  %v991_v51 = vand.u32 2147483648, %v979_v41  ;;  %vm985_vm8 = vweird.f32 %v979_v41  ;;  %v989_v59 = vand.u32 2147483647, %v979_v41 }
 0xa79   :  { %v921_v23 = vmul.f32 %v1816_v21, %v920_v22 }
 0xa7a   :  { %v992_v61 = vor.u32 1.1754944e-38, %v991_v51  ;;  %vm990_vm10 = vcmp.eq.f32.partialorder %v989_v59, 8.507059e+37 }
 0xa7b   :  { %v922_v24 = vadd.f32 %v1816_v21, %v921_v23 }
 0xa7d   :  { %v926_v30 = vsel %vm925_vm5, %v1816_v21, %v922_v24 }
 0xa7e   :  { %v931_v34 = vsel %vm928_vm6, %v930_v31, %v926_v30  ;;  %v1820_v42 = vpop.eup %1819 }
 0xa7f   :  { %v981_v43 = vmul.f32 %v1820_v42, %v979_v41  ;;  %vm986_vm7 = vweird.f32 %v1820_v42  ;;  %v946_v2 = vsub.f32 1.0, %v931_v34  ;;  %v952_v49 = vmul.f32 %v931_v34, %v2460_v54 }
 0xa80   :  { %vm987_vm9 = vmor %vm985_vm8, %vm986_vm7 }
 0xa81   :  { %v982_v46 = vsub.f32 1.0, %v981_v43  ;;  %v1855_v43 = vld [vmem:[%s2662_s10] ss:$0 sm:$0xff] }
 0xa83   :  { %v983_v47 = vmul.f32 %v1820_v42, %v982_v46 }
 0xa85   :  { %v984_v48 = vadd.f32 %v1820_v42, %v983_v47 }
 0xa87   :  { %v988_v60 = vsel %vm987_vm9, %v1820_v42, %v984_v48 }
 0xa88   :  { %v993_v40 = vsel %vm990_vm10, %v992_v61, %v988_v60 }
 0xa89   :  { %v1008_v52 = vsub.f32 1.0, %v993_v40  ;;  %v1015_v6 = vmul.f32 %v993_v40, %v862_v45 }
 0xa98   :  { %v937_v33 = vpop.permute.xlu0 %936 }
 0xa99   :  { %v939_v36 = vmul.f32 %v937_v33, %v931_v34 }
 0xa9b   :  { %941 = vrot.lane.b32.xlu2 %v939_v36, %s2069_s20 }
 0xacd   :  { %v999_v25 = vpop.permute.xlu1 %998 }
 0xace   :  { %v1001_v56 = vmul.f32 %v999_v25, %v993_v40 }
 0xad0   :  { %1003 = vrot.lane.b32.xlu0 %v1001_v56, %s2069_s20 }
 0xaf5   :  { %v942_v4 = vpop.permute.xlu2 %941 }
 0xaf6   :  { %v944_v8 = vadd.f32 %v942_v4, %v933_v1 }
 0xaf8   :  { %1821 = vtanh.f32 %v944_v8 }
 0xafe   :  { %v1822_v9 = vpop.eup %1821 }
 0xaff   :  { %948 = vrot.lane.b32.xlu1 %v1822_v9, %s2072_s11 }
 0xb42   :  { %v1004_v11 = vpop.permute.xlu0 %1003 }
 0xb43   :  { %v1006_v35 = vadd.f32 %v1004_v11, %v2486_v10 }
 0xb45   :  { %1823 = vtanh.f32 %v1006_v35 }
 0xb4b   :  { %v1824_v53 = vpop.eup %1823 }
 0xb4c   :  { %1010 = vrot.lane.b32.xlu2 %v1824_v53, %s2072_s11 }
 0xb71   :  { %v949_v57 = vpop.permute.xlu1 %948 }
 0xb72   :  { %v951_v50 = vmul.f32 %v949_v57, %v946_v2 }
 0xb74   :  { %v2491_v5 = vadd.f32 %v952_v49, %v951_v50 }
 0xb76   :  { %1043 = vrot.lane.b32.xlu0 %v2491_v5, %s2072_s11 }
 0xba6   :  { %v1011_v44 = vpop.permute.xlu2 %1010 }
 0xba7   :  { %v1013_v58 = vmul.f32 %v1011_v44, %v1008_v52 }
 0xba9   :  { %v2497_v55 = vadd.f32 %v1015_v6, %v1013_v58 }
 0xbab   :  { %1018 = vrot.lane.b32.xlu1 %v2497_v55, %s2072_s11 }
 0xbe8   :  { %v1044_v12 = vpop.permute.xlu0 %1043 }
 0xbe9   :  { %1730 = vmatmul.msk.f32.vlgmr.msra.gmra.mxu2 %vm268_vm1, %v1044_v12 }
 0xc1d   :  { %v1019_v16 = vpop.permute.xlu1 %1018 }
 0xc1e   :  { %1729 = vmatmul.msk.f32.vlgmr.msrb.gmra.mxu1 %vm268_vm1, %v1019_v16  ;;  %1732 = vmatmul.msk.f32.vlgmr.msra.gmra.mxu3 %vm268_vm1, %v1019_v16 }
 0xc6c   :  { %v1064_v18 = vpop.f32.mrf.mxu2 }
 0xc6d   :  { %v1089_v17 = vadd.f32 %v1064_v18, %v2343_v7 }
 0xc6f   :  { %1091 = vrot.lane.b32.xlu2 %v1089_v17, %s2069_s20 }
 0xc9b   :  { %v1039_v3 = vpop.f32.mrf.mxu1 }
 0xc9c   :  { %v1067_v45 = vadd.f32 %v1064_v18, %v1039_v3  ;;  %v1088_v35 = vadd.f32 %v1039_v3, %v2374_v62  ;;  %v1172_v18 = vrot.slane %v2497_v55, 6 }
 0xc9e   :  { %v1068_v19 = vadd.f32 %v2363_v13, %v1067_v45 }
 0xca0   :  { %v1731_v26 = vmul.f32 -1.442695, %v1068_v19 }
 0xca1   :  { %v1126_v21 = vpop.f32.mrf.mxu3 }
 0xca2   :  { %1825 = vpow2.f32 %v1731_v26  ;;  %v1153_v15 = vadd.f32 %v1126_v21, %v2242_v20  ;;  %v1130_v41 = vrot.slane %v1126_v21, 6 }
 0xca4   :  { %v1155_v22 = vrot.slane %v1153_v15, 6  ;;  %v1132_v42 = vadd.f32 %v1130_v41, %v2395_v0 }
 0xca6   :  { %1156 = vrot.lane.b32.xlu0 %v1155_v22, %s2069_s20  ;;  %v1133_v46 = vadd.f32 %v1855_v43, %v1132_v42 }
 0xca8   :  { %v1826_v23 = vpop.eup %1825  ;;  %v1733_v47 = vmul.f32 -1.442695, %v1133_v46 }
 0xca9   :  { %v1072_v24 = vadd.f32 1.0, %v1826_v23 }
 0xcab   :  { %1827 = vrcp.f32 %v1072_v24  ;;  %v1084_v33 = vand.u32 2147483648, %v1072_v24  ;;  %vm1078_vm12 = vweird.f32 %v1072_v24  ;;  %v1082_v34 = vand.u32 2147483647, %v1072_v24 }
 0xcac   :  { %1829 = vpow2.f32 %v1733_v47 }
 0xcad   :  { %v1085_v37 = vor.u32 1.1754944e-38, %v1084_v33  ;;  %vm1083_vm14 = vcmp.eq.f32.partialorder %v1082_v34, 8.507059e+37 }
 0xcb1   :  { %v1828_v28 = vpop.eup %1827 }
 0xcb2   :  { %v1074_v29 = vmul.f32 %v1828_v28, %v1072_v24  ;;  %vm1079_vm11 = vweird.f32 %v1828_v28  ;;  %v1830_v48 = vpop.eup %1829 }
 0xcb3   :  { %vm1080_vm13 = vmor %vm1078_vm12, %vm1079_vm11  ;;  %v1137_v51 = vadd.f32 1.0, %v1830_v48 }
 0xcb4   :  { %v1075_v30 = vsub.f32 1.0, %v1074_v29 }
 0xcb5   :  { %1831 = vrcp.f32 %v1137_v51  ;;  %v1149_v56 = vand.u32 2147483648, %v1137_v51  ;;  %vm1143_vm0 = vweird.f32 %v1137_v51  ;;  %v1147_v1 = vand.u32 2147483647, %v1137_v51 }
 0xcb6   :  { %v1076_v31 = vmul.f32 %v1828_v28, %v1075_v30 }
 0xcb7   :  { %v1150_v4 = vor.u32 1.1754944e-38, %v1149_v56  ;;  %vm1148_vm3 = vcmp.eq.f32.partialorder %v1147_v1, 8.507059e+37  ;;  %v1275_v56 = vperm.slane %v2380_v27, 0  ;;  %v1292_v1 = vrot.slane %v2460_v54, 1 }
 0xcb8   :  { %v1077_v32 = vadd.f32 %v1828_v28, %v1076_v31 }
 0xcba   :  { %v1081_v36 = vsel %vm1080_vm13, %v1828_v28, %v1077_v32 }
 0xcbb   :  { %v1086_v38 = vsel %vm1083_vm14, %v1085_v37, %v1081_v36  ;;  %v1832_v59 = vpop.eup %1831  ;;  %vm1428_vm14 = vcmask 62464  }
 0xcbc   :  { %v1139_v60 = vmul.f32 %v1832_v59, %v1137_v51  ;;  %vm1144_vm15 = vweird.f32 %v1832_v59  ;;  %v1101_v44 = vsub.f32 1.0, %v1086_v38  ;;  %v1107_v58 = vmul.f32 %v1086_v38, %v2491_v5  ;;  %v173_v51 = vld [vmem:[%s2657_s5 + $0x18] sm:$0xff] }
 0xcbd   :  { %vm1145_vm2 = vmor %vm1143_vm0, %vm1144_vm15  ;;  %1349 = vmatpush.msrb.mxu2 %v173_v51  ;;  %1374 = vmatpush.msrb.mxu3 %v173_v51  ;;  %vm1630_vm15 = vcmask 257026  }
 0xcbe   :  { %v1140_v61 = vsub.f32 1.0, %v1139_v60  ;;  %v170_v60 = vld [vmem:[%s2657_s5] sm:$0xff] }
 0xcc0   :  { %v1141_v40 = vmul.f32 %v1832_v59, %v1140_v61  ;;  %v1270_v61 = vshrl.u32 %v220_v14, 7 }
 0xcc2   :  { %v1142_v25 = vadd.f32 %v1832_v59, %v1141_v40  ;;  %v1272_v40 = vrot.slane %v2380_v27, 1  ;;  %vm1271_vm8 = vcmp.eq.s32.totalorder %v1270_v61, 0  ;;  %vm1281_vm9 = vcmp.eq.s32.totalorder %v1270_v61, 1 }
 0xcc3   :  { %vm1291_vm10 = vcmp.eq.s32.totalorder %v1270_v61, 2  ;;  %vm1301_vm11 = vcmp.eq.s32.totalorder %v1270_v61, 3  ;;  %vm1311_vm12 = vcmp.eq.s32.totalorder %v1270_v61, 4  ;;  %vm1321_vm13 = vcmp.eq.s32.totalorder %v1270_v61, 5 }
 0xcc4   :  { %v1146_v0 = vsel %vm1145_vm2, %v1832_v59, %v1142_v25  ;;  %v172_v59 = vld [vmem:[%s2657_s5 + $0x10] sm:$0xff]  ;;  %v1282_v25 = vrot.slane %v2421_v63, 1 }
 0xcc5   :  { %v1151_v9 = vsel %vm1148_vm3, %v1150_v4, %v1146_v0  ;;  %1350 = vmatpush.msrb.mxu2 %v172_v59  ;;  %1375 = vmatpush.msrb.mxu3 %v172_v59  ;;  %v1276_v0 = vperm.slane %v1272_v40, 0  ;;  %v1285_v4 = vperm.slane %v2421_v63, 0 }
 0xcc6   :  { %v1166_v17 = vsub.f32 1.0, %v1151_v9  ;;  %v1174_v45 = vmul.f32 %v1172_v18, %v1151_v9 }
 0xcc9   :  { %v1092_v20 = vpop.permute.xlu2 %1091 }
 0xcca   :  { %v1094_v39 = vmul.f32 %v1092_v20, %v1086_v38 }
 0xccc   :  { %1096 = vrot.lane.b32.xlu1 %v1094_v39, %s2069_s20 }
 0xd18   :  { %v1157_v8 = vpop.permute.xlu0 %1156 }
 0xd19   :  { %v1159_v11 = vmul.f32 %v1157_v8, %v1151_v9  ;;  %v1302_v8 = vrot.slane %v2491_v5, 1 }
 0xd1b   :  { %1161 = vrot.lane.b32.xlu2 %v1159_v11, %s2069_s20  ;;  %v1286_v11 = vperm.slane %v1282_v25, 0 }
 0xd3e   :  { %v1097_v53 = vpop.permute.xlu1 %1096 }
 0xd3f   :  { %v1099_v2 = vadd.f32 %v1097_v53, %v1088_v35  ;;  %v1295_v35 = vperm.slane %v2460_v54, 0 }
 0xd41   :  { %1833 = vtanh.f32 %v1099_v2  ;;  %v1305_v2 = vperm.slane %v2491_v5, 0  ;;  %v1280_v5 = vsel %vm1271_vm8, %v1276_v0, 0.0  ;;  %v161_v0 = vld [vmem:[%s2682_s9 + $0x8] sm:$0xff] }
 0xd47   :  { %v1834_v57 = vpop.eup %1833 }
 0xd48   :  { %1103 = vrot.lane.b32.xlu0 %v1834_v57, %s2072_s11 }
 0xd75   :  { %v1162_v49 = vpop.permute.xlu2 %1161 }
 0xd76   :  { %v1164_v50 = vadd.f32 %v1162_v49, %v2486_v10  ;;  %v1279_v49 = vsel %vm1271_vm8, %v1275_v56, 0.0 }
 0xd77   :  { %v1289_v54 = vsel %vm1281_vm9, %v1285_v4, %v1279_v49  ;;  %v160_v4 = vld [vmem:[%s2682_s9] sm:$0xff] }
 0xd78   :  { %1835 = vtanh.f32 %v1164_v50  ;;  %v1296_v50 = vperm.slane %v1292_v1, 0 }
 0xd7e   :  { %v1836_v52 = vpop.eup %1835 }
 0xd7f   :  { %1168 = vrot.lane.b32.xlu1 %v1836_v52, %s2072_s11 }
 0xdba   :  { %v1104_v6 = vpop.permute.xlu0 %1103 }
 0xdbb   :  { %v1106_v12 = vmul.f32 %v1104_v6, %v1101_v44  ;;  %v1306_v44 = vperm.slane %v1302_v8, 0  ;;  %v1299_v6 = vsel %vm1291_vm10, %v1295_v35, %v1289_v54  ;;  %v177_v8 = vld [vmem:[%s2658_s6 + $0x18] sm:$0xff] }
 0xdbd   :  { %v2520_v16 = vadd.f32 %v1107_v58, %v1106_v12  ;;  %v1309_v12 = vsel %vm1301_vm11, %v1305_v2, %v1299_v6 }
 0xdbf   :  { %1203 = vrot.lane.b32.xlu2 %v2520_v16, %s2072_s11  ;;  %v1312_v14 = vrot.slane %v2520_v16, 1  ;;  %v1315_v63 = vperm.slane %v2520_v16, 0 }
 0xdc1   :  { %v1316_v58 = vperm.slane %v1312_v14, 0 }
 0xdf1   :  { %v1169_v3 = vpop.permute.xlu1 %1168 }
 0xdf2   :  { %v1171_v10 = vmul.f32 %v1169_v3, %v1166_v17  ;;  %v1290_v17 = vsel %vm1281_vm9, %v1286_v11, %v1280_v5  ;;  %v1319_v3 = vsel %vm1311_vm12, %v1315_v63, %v1309_v12  ;;  %v175_v11 = vld [vmem:[%s2658_s6 + $0x8] sm:$0xff] }
 0xdf4   :  { %v2525_v19 = vadd.f32 %v1174_v45, %v1171_v10  ;;  %v1300_v45 = vsel %vm1291_vm10, %v1296_v50, %v1290_v17  ;;  %vm1620_vm10 = vcmask 1042434  }
 0xdf6   :  { %v1177_v26 = vrot.slane %v2525_v19, 2 }
 0xdf8   :  { %1178 = vrot.lane.b32.xlu0 %v1177_v26, %s2072_s11  ;;  %v1310_v26 = vsel %vm1301_vm11, %v1306_v44, %v1300_v45  ;;  %vm1626_vm11 = vcmask 1043459  }
 0xe19   :  { %v1204_v21 = vpop.permute.xlu2 %1203 }
 0xe1a   :  { %1735 = vmatmul.msk.f32.vlgmr.msra.gmra.mxu1 %vm268_vm1, %v1204_v21 }
 0xe6a   :  { %v1179_v15 = vpop.permute.xlu0 %1178 }
 0xe6b   :  { %1734 = vmatmul.msk.f32.vlgmr.msra.gmra.mxu0 %vm268_vm1, %v1179_v15  ;;  %v1320_v15 = vsel %vm1311_vm12, %v1316_v58, %v1310_v26  ;;  %vm1618_vm12 = vcmask 254976  }
 0xe97   :  { %v1224_v22 = vpop.f32.mrf.mxu1 }
 0xe98   :  { %v1249_v23 = vadd.f32 %v1224_v22, %v2343_v7 }
 0xe9a   :  { %1251 = vrot.lane.b32.xlu1 %v1249_v23, %s2069_s20  ;;  %v165_v23 = vld [vmem:[%s2656_s4 + $0x18] sm:$0xff] }
 0xe9b   :  { %1397 = vmatpush.msrb.mxu0 %v165_v23 }
 0xee8   :  { %v1199_v55 = vpop.f32.mrf.mxu0 }
 0xee9   :  { %v1227_v24 = vadd.f32 %v1224_v22, %v1199_v55  ;;  %v1248_v43 = vadd.f32 %v1199_v55, %v2374_v62  ;;  %v171_v62 = vld [vmem:[%s2657_s5 + $0x8] sm:$0xff]  ;;  %v164_v55 = vld [vmem:[%s2656_s4 + $0x10] sm:$0xff] }
 0xeea   :  { %1351 = vmatpush.msrb.mxu2 %v171_v62  ;;  %1376 = vmatpush.msrb.mxu3 %v171_v62 }
 0xeeb   :  { %v1228_v28 = vadd.f32 %v2363_v13, %v1227_v24  ;;  %v163_v24 = vld [vmem:[%s2656_s4 + $0x8] sm:$0xff]  ;;  %1398 = vmatpush.msrb.mxu0 %v164_v55 }
 0xeec   :  { %1352 = vmatpush.msrb.mxu2 %v170_v60  ;;  %1377 = vmatpush.msrb.mxu3 %v170_v60 }
 0xeed   :  { %v1736_v29 = vmul.f32 -1.442695, %v1228_v28  ;;  %1399 = vmatpush.msrb.mxu0 %v163_v24 }
 0xeee   :  { %1519 = vmatpush.msra.mxu3 %v161_v0  ;;  %1496 = vmatpush.msra.mxu2 %v160_v4 }
 0xeef   :  { %1837 = vpow2.f32 %v1736_v29 }
 0xef5   :  { %v1838_v30 = vpop.eup %1837 }
 0xef6   :  { %v1232_v31 = vadd.f32 1.0, %v1838_v30  ;;  %v162_v30 = vld [vmem:[%s2656_s4] sm:$0xff] }
 0xef7   :  { %1400 = vmatpush.msrb.mxu0 %v162_v30 }
 0xef8   :  { %1839 = vrcp.f32 %v1232_v31  ;;  %v1244_v20 = vand.u32 2147483648, %v1232_v31  ;;  %vm1238_vm5 = vweird.f32 %v1232_v31  ;;  %v1242_v7 = vand.u32 2147483647, %v1232_v31 }
 0xefa   :  { %v1245_v39 = vor.u32 1.1754944e-38, %v1244_v20  ;;  %vm1243_vm7 = vcmp.eq.f32.partialorder %v1242_v7, 8.507059e+37  ;;  %v167_v20 = vld [vmem:[%s2656_s4 + $0x28] sm:$0xff]  ;;  %v166_v7 = vld [vmem:[%s2656_s4 + $0x20] sm:$0xff] }
 0xefe   :  { %v1840_v32 = vpop.eup %1839 }
 0xeff   :  { %v1234_v33 = vmul.f32 %v1840_v32, %v1232_v31  ;;  %vm1239_vm4 = vweird.f32 %v1840_v32  ;;  %v181_v31 = vld [vmem:[#allocation5 + $0x18] sm:$0xff] }
 0xf00   :  { %vm1240_vm6 = vmor %vm1238_vm5, %vm1239_vm4  ;;  %1536 = vmatpush.msra.mxu0 %v181_v31  ;;  %vm1477_vm5 = vcmask 64512  }
 0xf01   :  { %v1235_v34 = vsub.f32 1.0, %v1234_v33  ;;  %v179_v33 = vld [vmem:[#allocation5 + $0x8] sm:$0xff] }
 0xf03   :  { %v1236_v36 = vmul.f32 %v1840_v32, %v1235_v34  ;;  %v178_v34 = vld [vmem:[#allocation5] sm:$0xff] }
 0xf05   :  { %v1237_v37 = vadd.f32 %v1840_v32, %v1236_v36  ;;  %v169_v36 = vld [vmem:[%s2656_s4 + $0x38] sm:$0xff] }
 0xf06   :  { %1420 = vmatpush.msrb.mxu1 %v169_v36 }
 0xf07   :  { %v1241_v38 = vsel %vm1240_vm6, %v1840_v32, %v1237_v37  ;;  %v180_v32 = vld [vmem:[#allocation5 + $0x10] sm:$0xff]  ;;  %v168_v37 = vld [vmem:[%s2656_s4 + $0x30] sm:$0xff] }
 0xf08   :  { %v1246_v41 = vsel %vm1243_vm7, %v1245_v39, %v1241_v38  ;;  %1537 = vmatpush.msra.mxu0 %v180_v32  ;;  %1421 = vmatpush.msrb.mxu1 %v168_v37 }
 0xf09   :  { %v1261_v9 = vsub.f32 1.0, %v1246_v41  ;;  %v1267_v57 = vmul.f32 %v1246_v41, %v2520_v16 }
 0xf0a   :  { %1538 = vmatpush.msra.mxu0 %v179_v33  ;;  %1422 = vmatpush.msrb.mxu1 %v167_v20 }
 0xf0c   :  { %v1252_v13 = vpop.permute.xlu1 %1251  ;;  %1539 = vmatpush.msra.mxu0 %v178_v34  ;;  %1423 = vmatpush.msrb.mxu1 %v166_v7 }
 0xf0d   :  { %v1254_v42 = vmul.f32 %v1252_v13, %v1246_v41 }
 0xf0e   :  { %1556 = vmatpush.msra.mxu1 %v181_v31 }
 0xf0f   :  { %1256 = vrot.lane.b32.xlu2 %v1254_v42, %s2069_s20 }
 0xf10   :  { %1557 = vmatpush.msra.mxu1 %v180_v32 }
 0xf12   :  { %1558 = vmatpush.msra.mxu1 %v179_v33 }
 0xf14   :  { %1559 = vmatpush.msra.mxu1 %v178_v34 }
 0xf69   :  { %v1257_v46 = vpop.permute.xlu2 %1256 }
 0xf6a   :  { %v1259_v47 = vadd.f32 %v1257_v46, %v1248_v43 }
 0xf6c   :  { %1841 = vtanh.f32 %v1259_v47 }
 0xf72   :  { %v1842_v48 = vpop.eup %1841 }
 0xf73   :  { %1263 = vrot.lane.b32.xlu0 %v1842_v48, %s2072_s11 }
 0xfe5   :  { %v1264_v53 = vpop.permute.xlu0 %1263 }
 0xfe6   :  { %v1266_v27 = vmul.f32 %v1264_v53, %v1261_v9  ;;  %v176_v9 = vld [vmem:[%s2658_s6 + $0x10] sm:$0xff] }
 0xfe8   :  { %v2562_v52 = vadd.f32 %v1267_v57, %v1266_v27 }
 0xfea   :  { %v1326_v18 = vperm.slane %v2562_v52, 0  ;;  %v1323_v16 = vrot.slane %v2562_v52, 1  ;;  %v1650_v42 = vrot.slane %v2562_v52, 6 }
 0xfec   :  { %v1330_v10 = vsel %vm1321_vm13, %v1326_v18, %v1319_v3  ;;  %v1327_v21 = vperm.slane %v1323_v16, 0 }
 0xfed   :  { %1333 = vrot.lane.b32.xlu2 %v1330_v10, %s2072_s11 }
 0xfee   :  { %v1331_v22 = vsel %vm1321_vm13, %v1327_v21, %v1320_v15  ;;  %v174_v15 = vld [vmem:[%s2658_s6] sm:$0xff]  ;;  %vm1632_vm13 = vcmask 1044484   ;;  %s2075_s6 = smov [#allocation13]  }
 0xfef   :  { %1358 = vrot.lane.b32.xlu1 %v1331_v22, %s2072_s11  ;;  %s1663_s19 = sshll.u32 %s2075_s6, 4  ;;  %s1664_s19 = int_to_ptr.vmem [resolvable:$true] %s1663_s19 }
0x1047   :  { %v1334_v28 = vpop.permute.xlu2 %1333 }
0x1048   :  { %1737 = vmatmul.msk.f32.vlgmr.msrb.gmra.mxu2 %vm268_vm1, %v1334_v28 }
0x1049   :  { %1579 = vmatpush.msrb.mxu2 %v177_v8 }
0x104b   :  { %1580 = vmatpush.msrb.mxu2 %v176_v9 }
0x104d   :  { %1581 = vmatpush.msrb.mxu2 %v175_v11 }
0x104f   :  { %1582 = vmatpush.msrb.mxu2 %v174_v15 }
0x1061   :  { %v1359_v29 = vpop.permute.xlu1 %1358 }
0x1062   :  { %1738 = vmatmul.msk.f32.vlgmr.msrb.gmra.mxu3 %vm268_vm1, %v1359_v29 }
0x1063   :  { %1602 = vmatpush.msrb.mxu3 %v177_v8 }
0x1065   :  { %1603 = vmatpush.msrb.mxu3 %v176_v9 }
0x1067   :  { %1604 = vmatpush.msrb.mxu3 %v175_v11 }
0x1069   :  { %1605 = vmatpush.msrb.mxu3 %v174_v15 }
0x10cb   :  { %v1354_v38 = vpop.f32.mrf.mxu2 }
0x10cc   :  { %1739 = vmatmul.msk.f32.vlgmr.msrb.gmra.mxu0 %vm268_vm1, %v1354_v38 }
0x10d4   :  { %1743 = vmatmul.msk.f32.vlgmr.msra.gmra.mxu0 %vm268_vm1, %v1334_v28 }
0x10e5   :  { %v1379_v39 = vpop.f32.mrf.mxu3 }
0x10e6   :  { %1740 = vmatmul.msk.f32.vlgmr.msrb.gmra.mxu1 %vm268_vm1, %v1379_v39 }
0x10ee   :  { %1744 = vmatmul.msk.f32.vlgmr.msra.gmra.mxu1 %vm268_vm1, %v1359_v29 }
0x1149   :  { %v1402_v41 = vpop.f32.mrf.mxu0 }
0x114a   :  { %v1429_v13 = vsel %vm1428_vm14, %v1402_v41, -inf }
0x114b   :  { %1430 = vmax.xlane.f32.xlu1 %v1429_v13 }
0x1151   :  { %v1541_v29 = vpop.f32.mrf.mxu0 }
0x1163   :  { %v1425_v43 = vpop.f32.mrf.mxu1 }
0x1164   :  { %1653 = vrot.lane.b32.xlu1 %v1650_v42, %s2072_s11  ;;  %v1432_v46 = vsel %vm1428_vm14, %v1425_v43, -inf }
0x1165   :  { %1433 = vmax.xlane.f32.xlu0 %v1432_v46 }
0x116b   :  { %v1561_v24 = vpop.f32.mrf.mxu1 }
0x1179   :  { %1651 = vrot.lane.b32.xlu0 %v2525_v19, %s2072_s11 }
0x11be   :  { %v1431_v47 = vpop.xlane.xlu1 %1430 }
0x11bf   :  { %v1435_v62 = vsub.f32 %v1402_v41, %v1431_v47 }
0x11c1   :  { %v1437_v61 = vmul.f32 1.442695, %v1435_v62 }
0x11d6   :  { %v1654_v48 = vpop.permute.xlu1 %1653 }
0x11d7   :  { %1658 = vst.msk [vmem:[#allocation14] sm:$0xc] %vm1630_vm15, %v1654_v48 }
0x11d8   :  { %v1434_v51 = vpop.xlane.xlu0 %1433 }
0x11d9   :  { %v1436_v59 = vsub.f32 %v1425_v43, %v1434_v51 }
0x11db   :  { %v1439_v60 = vmul.f32 1.442695, %v1436_v59 }
0x11dd   :  { %1843 = vpow2.f32 %v1439_v60 }
0x11de   :  { %1845 = vpow2.f32 %v1437_v61 }
0x11e3   :  { %v1844_v40 = vpop.eup %1843 }
0x11e4   :  { %v1444_v25 = vsel %vm1428_vm14, %v1844_v40, 0.0  ;;  %v1846_v56 = vpop.eup %1845 }
0x11e5   :  { %1445 = vadd.xlane.f32.xlu2 %v1444_v25  ;;  %v1441_v19 = vsel %vm1428_vm14, %v1846_v56, 0.0  ;;  %vm1624_vm14 = vcmask 256001  }
0x11eb   :  { %v1652_v1 = vpop.permute.xlu0 %1651 }
0x11ec   :  { %1657 = vst.msk [vmem:[#allocation14 - $0x2] sm:$0xc] %vm1630_vm15, %v1652_v1 }
0x11ed   :  { %1442 = vadd.xlane.f32.xlu2 %v1441_v19  ;;  %1684 = dma.vmem_to_hbm [thread:$0]  %s1677_s3, 64, %s1679_s23, [#allocation15], %s2071_s12, %s2071_s12, %s2074_s17  }
0x1258   :  { %v1446_v35 = vpop.xlane.xlu2 %1445 }
0x1259   :  { %1847 = vrcp.f32 %v1446_v35  ;;  %v1472_v27 = vand.u32 2147483648, %v1446_v35  ;;  %v1470_v50 = vand.u32 2147483647, %v1446_v35  ;;  %vm1466_vm2 = vweird.f32 %v1446_v35 }
0x125b   :  { %v1473_v54 = vor.u32 1.1754944e-38, %v1472_v27  ;;  %vm1471_vm4 = vcmp.eq.f32.partialorder %v1470_v50, 8.507059e+37 }
0x125f   :  { %v1848_v53 = vpop.eup %1847 }
0x1260   :  { %v1462_v14 = vmul.f32 %v1848_v53, %v1446_v35  ;;  %v1443_v2 = vpop.xlane.xlu2 %1442  ;;  %vm1467_vm0 = vweird.f32 %v1848_v53 }
0x1261   :  { %1849 = vrcp.f32 %v1443_v2  ;;  %vm1468_vm3 = vmor %vm1466_vm2, %vm1467_vm0  ;;  %v1458_v18 = vand.u32 2147483648, %v1443_v2  ;;  %v1456_v16 = vand.u32 2147483647, %v1443_v2  ;;  %vm1452_vm7 = vweird.f32 %v1443_v2 }
0x1262   :  { %v1463_v57 = vsub.f32 1.0, %v1462_v14  ;;  %vm1638_vm0 = vcmask 1045509   ;;  %vm1644_vm2 = vcmask 1046534  }
0x1263   :  { %v1459_v45 = vor.u32 1.1754944e-38, %v1458_v18  ;;  %vm1457_vm9 = vcmp.eq.f32.partialorder %v1456_v16, 8.507059e+37 }
0x1264   :  { %v1464_v49 = vmul.f32 %v1848_v53, %v1463_v57 }
0x1266   :  { %v1465_v63 = vadd.f32 %v1848_v53, %v1464_v49 }
0x1267   :  { %v1850_v52 = vpop.eup %1849 }
0x1268   :  { %v1469_v44 = vsel %vm1468_vm3, %v1848_v53, %v1465_v63  ;;  %v1448_v6 = vmul.f32 %v1850_v52, %v1443_v2  ;;  %vm1453_vm6 = vweird.f32 %v1850_v52  ;;  %vm1636_vm3 = vcmask 258051  }
0x1269   :  { %v1474_v5 = vsel %vm1471_vm4, %v1473_v54, %v1469_v44  ;;  %vm1454_vm8 = vmor %vm1452_vm7, %vm1453_vm6  ;;  %vm1642_vm4 = vcmask 259076  }
0x126a   :  { %v1449_v58 = vsub.f32 1.0, %v1448_v6  ;;  %v1476_v12 = vmul.f32 %v1844_v40, %v1474_v5 }
0x126c   :  { %v1450_v17 = vmul.f32 %v1850_v52, %v1449_v58  ;;  %1742 = vmatmul.msk.f32.vlgmr.msra.gmra.mxu3 %vm1477_vm5, %v1476_v12 }
0x126e   :  { %v1451_v3 = vadd.f32 %v1850_v52, %v1450_v17 }
0x1270   :  { %v1455_v10 = vsel %vm1454_vm8, %v1850_v52, %v1451_v3 }
0x1271   :  { %v1460_v26 = vsel %vm1457_vm9, %v1459_v45, %v1455_v10 }
0x1272   :  { %v1475_v21 = vmul.f32 %v1846_v56, %v1460_v26 }
0x1274   :  { %1741 = vmatmul.msk.f32.vlgmr.msra.gmra.mxu2 %vm1477_vm5, %v1475_v21  ;;  %vm1648_vm5 = vcmask 260101  }
0x12ef   :  { %v1521_v22 = vpop.f32.mrf.mxu3 }
0x12f0   :  { %1746 = vmatmul.msk.f32.vlgmr.msrb.gmra.mxu3 %vm268_vm1, %v1521_v22 }
0x12f7   :  { %v1498_v23 = vpop.f32.mrf.mxu2 }
0x12f8   :  { %1745 = vmatmul.msk.f32.vlgmr.msrb.gmra.mxu2 %vm268_vm1, %v1498_v23  ;;  %vm1615_vm1 = vcmask 1041409  }
0x1373   :  { %v1607_v55 = vpop.f32.mrf.mxu3 }
0x1374   :  { %v1608_v28 = vadd.f32 %v1607_v55, %v1561_v24 }
0x1376   :  { %1851 = vtanh.f32 %v1608_v28 }
0x137b   :  { %v1584_v30 = vpop.f32.mrf.mxu2 }
0x137c   :  { %v1585_v31 = vadd.f32 %v1584_v30, %v1541_v29  ;;  %v1852_v32 = vpop.eup %1851 }
0x137d   :  { %v1614_v33 = vrot.slane %v1852_v32, 7 }
0x137e   :  { %1853 = vtanh.f32 %v1585_v31 }
0x1384   :  { %v1854_v34 = vpop.eup %1853 }
0x1385   :  { %v1616_v36 = vsel %vm1615_vm1, %v1614_v33, %v1854_v34  ;;  %v1621_v37 = vsel %vm1620_vm10, %v1614_v33, %v1854_v34  ;;  %v1627_v20 = vsel %vm1626_vm11, %v1614_v33, %v1854_v34  ;;  %v1633_v7 = vsel %vm1632_vm13, %v1614_v33, %v1854_v34 }
0x1386   :  { %1619 = vst.msk [vmem:[#allocation13] sm:$0x3] %vm1618_vm12, %v1616_v36  ;;  %v1639_v38 = vsel %vm1638_vm0, %v1614_v33, %v1854_v34  ;;  %v1645_v39 = vsel %vm1644_vm2, %v1614_v33, %v1854_v34 }
0x1387   :  { %1625 = vst.msk [vmem:[#allocation13 + $0x1] sm:$0x6] %vm1624_vm14, %v1621_v37 }
0x1388   :  { %1631 = vst.msk [vmem:[#allocation13 + $0x2] sm:$0xc] %vm1630_vm15, %v1627_v20 }
0x1389   :  { %1637 = vst.msk [vmem:[#allocation13 + $0x3] sm:$0x18] %vm1636_vm3, %v1633_v7 }
0x138a   :  { %1643 = vst.msk [vmem:[#allocation13 + $0x4] sm:$0x30] %vm1642_vm4, %v1639_v38 }
0x138b   :  { %1649 = vst.msk [vmem:[#allocation13 + $0x5] sm:$0x60] %vm1648_vm5, %v1645_v39 }
0x138c   :  { %1671 = dma.vmem_to_hbm [thread:$0]  %s1664_s19, 192, %s1666_s7, [#allocation4], %s2071_s12, %s2071_s12, %s2074_s17  }
0x138d   :  { %2056 = dma.done.wait [#allocation4], 192  }
0x138e   :  { %2057 = vsyncadd [#allocation4], 4294967104 }
0x138f   :  { %2058 = dma.done.wait [#allocation15], 64  }
0x1390   :  { %2059 = vsyncadd [#allocation15], 4294967232 }
0x1391   :  { %1693 = vsyncpa [#allocation3], 1 }
0x1392   :  { %1694 = vsyncpa [#allocation6], 1 }
0x1393   :  { %1695 = vsyncpa [#allocation9], 1 }
0x1394   :  { %1696 = vsyncpa [#allocation12], 1 }
0x1395   :  { %1697 = vsyncpa [#allocation4], 1 }
0x1396   :  { %1698 = vsyncpa [#allocation15], 1 }

</bundles_post_ra>
